<compile_context>
chip_gen: v7x
topology: tpu7x:2x2x1
jax: 0.10.0
libtpu: 0.0.40
codegen_flags: <defaults>
</compile_context>

<pallas_src>
import jax
import jax.numpy as jnp
from jax.experimental import pallas as pl
from jax.experimental.pallas import tpu as pltpu


# ------------------------ Fused kernel: MLP + pool + FC --------------------- #

def stn3d_fused_kernel(x_ref,
                       w1_ref, b1_ref, w2_ref, b2_ref, w3_ref, b3_ref,
                       w4_ref, b4_ref, w5_ref, b5_ref, w6_ref, b6_ref,
                       out_ref, g_acc):
    # x_ref block: (TB, TN, C_pad) float32
    TB, TN, C = x_ref.shape
    M = TB * TN
    ni = pl.program_id(1)

    x = x_ref[...].reshape(M, C)                       # TN % 8 == 0 -> free reshape

    # ---- Layer 1 on the MXU (K = C_pad = 8; negligible extra MXU work) ----
    h1 = jnp.maximum(
        jnp.dot(x, w1_ref[...], preferred_element_type=jnp.float32) + b1_ref[...],
        0.0)                                                         # (M, 64)

    # ---- Layer 2: bf16 inputs, f32 accumulation ----
    h2 = jnp.maximum(
        jnp.dot(h1.astype(jnp.bfloat16), w2_ref[...],
                preferred_element_type=jnp.float32) + b2_ref[...],
        0.0)                                                         # (M, 128)

    # ---- Layer 3: pre-activation only; bias + ReLU deferred past the max ----
    z3 = jnp.dot(h2.astype(jnp.bfloat16), w3_ref[...],
                 preferred_element_type=jnp.float32)                 # (M, 1024)

    # Vectorized per-batch-row segment max over this point tile.
    seg = z3.reshape(TB, TN, 1024).max(axis=1)                       # (TB, 1024)

    # Running max over the point axis; init from the first segment (z3 < 0 possible).
    @pl.when(ni == 0)
    def _():
        g_acc[...] = seg

    @pl.when(ni != 0)
    def _():
        g_acc[...] = jnp.maximum(g_acc[...], seg)

    # ---- Final point step: deferred bias/ReLU + fused FC head ----
    @pl.when(ni == pl.num_programs(1) - 1)
    def _():
        g = jnp.maximum(g_acc[...] + b3_ref[...], 0.0)               # (TB, 1024)
        f1 = jnp.maximum(
            jnp.dot(g.astype(jnp.bfloat16), w4_ref[...],
                    preferred_element_type=jnp.float32) + b4_ref[...],
            0.0)                                                     # (TB, 512)
        f2 = jnp.maximum(
            jnp.dot(f1.astype(jnp.bfloat16), w5_ref[...],
                    preferred_element_type=jnp.float32) + b5_ref[...],
            0.0)                                                     # (TB, 256)
        # b6 already includes the folded eye(3)
        out_ref[...] = (jnp.dot(f2, w6_ref[...], preferred_element_type=jnp.float32)
                        + b6_ref[...]).astype(out_ref.dtype)         # (TB, 9)


# --------------------------------- Wrapper ---------------------------------- #

def _round_up(x, m):
    return ((x + m - 1) // m) * m


def _rep_spec(shape):
    """BlockSpec for a replicated (grid-invariant) full-array operand."""
    nd = len(shape)
    return pl.BlockSpec(shape, lambda bi, ni: (0,) * nd)


def stn3d_forward(x_ncw, params, *, m_target=2048):
    """x_ncw: (B, C_in, N) float32 (PyTorch NCW layout). Returns (B, 3, 3)."""
    B, C_in, N = x_ncw.shape
    x_bnc = jnp.transpose(x_ncw, (0, 2, 1)).astype(jnp.float32)      # (B, N, C)

    # ---- Tile selection: ~m_target rows per MXU step ----
    N_pad = _round_up(N, 8)
    if B <= 8 or B * N_pad <= m_target:
        # Single batch block (TB == B_pad) keeps the (TB, .) output blocks legal
        # without padding tiny batches up to 8.
        TB = B
        TN = min(N_pad, max(8, _round_up(max(1, m_target // TB), 8)))
    else:
        # Multiple batch blocks: TB multiple of 8 -> sublane-dense 2-D outputs,
        # and grid[0] >= 2 so v7x's two TensorCores both get work.
        TB = 8
        TN = min(N_pad, max(8, _round_up(m_target // TB, 8)))
    B_pad = _round_up(B, TB)
    N_pad = _round_up(N_pad, TN)

    # Edge padding (replicated real points / batch rows) never perturbs the
    # per-batch max; padded batch rows are discarded at the end.
    if N_pad != N or B_pad != B:
        x_bnc = jnp.pad(x_bnc, ((0, B_pad - B), (0, N_pad - N), (0, 0)), mode='edge')

    # Zero-pad channels to 8 so layer 1's contraction dim is MXU/sublane aligned.
    C_pad = _round_up(C_in, 8)
    if C_pad != C_in:
        x_bnc = jnp.pad(x_bnc, ((0, 0), (0, 0), (0, C_pad - C_in)))

    p = params
    w1 = p['w1']
    if w1.shape[0] != C_pad:
        w1 = jnp.pad(w1, ((0, C_pad - w1.shape[0]), (0, 0)))

    grid = (B_pad // TB, N_pad // TN)

    out9 = pl.pallas_call(
        stn3d_fused_kernel,
        out_shape=jax.ShapeDtypeStruct((B_pad, 9), jnp.float32),
        grid_spec=pltpu.PrefetchScalarGridSpec(
            num_scalar_prefetch=0,
            grid=grid,
            in_specs=[
                pl.BlockSpec((TB, TN, C_pad), lambda bi, ni: (bi, ni, 0)),
                _rep_spec(w1.shape), _rep_spec(p['b1'].shape),
                _rep_spec(p['w2'].shape), _rep_spec(p['b2'].shape),
                _rep_spec(p['w3'].shape), _rep_spec(p['b3'].shape),
                _rep_spec(p['w4'].shape), _rep_spec(p['b4'].shape),
                _rep_spec(p['w5'].shape), _rep_spec(p['b5'].shape),
                _rep_spec(p['w6'].shape), _rep_spec(p['b6'].shape),
            ],
            out_specs=pl.BlockSpec((TB, 9), lambda bi, ni: (bi, 0)),
            scratch_shapes=[pltpu.VMEM((TB, 1024), jnp.float32)],
        ),
        compiler_params=pltpu.CompilerParams(
            dimension_semantics=("parallel", "arbitrary"),
            vmem_limit_bytes=48 * 1024 * 1024),
    )(x_bnc, w1, p['b1'], p['w2'], p['b2'], p['w3'], p['b3'],
      p['w4'], p['b4'], p['w5'], p['b5'], p['w6'], p['b6'])

    return out9[:B].reshape(B, 3, 3)


# ----------------------------- Parameter setup ------------------------------ #

def make_params(key, c_in=3):
    """Deterministic synthetic parameters; inference-mode BN folded into (W, b);
    eye(3) folded into the last bias; all big matmul weights stored as bf16."""
    eps = 1e-5
    dims = [(c_in, 64), (64, 128), (128, 1024), (1024, 512), (512, 256), (256, 9)]
    has_bn = [True, True, True, True, True, False]

    keys = jax.random.split(key, len(dims) * 6)
    ws, bs = [], []
    ki = 0
    for (din, dout), bn in zip(dims, has_bn):
        w = jax.random.normal(keys[ki], (dout, din), jnp.float32) * 0.05; ki += 1
        b = jax.random.normal(keys[ki], (dout,), jnp.float32) * 0.05;     ki += 1
        if bn:
            gamma = 0.5 + jax.random.uniform(keys[ki], (dout,), jnp.float32); ki += 1
            beta  = jax.random.normal(keys[ki], (dout,), jnp.float32) * 0.1;  ki += 1
            rmean = jax.random.normal(keys[ki], (dout,), jnp.float32) * 0.1;  ki += 1
            rvar  = 0.5 + jax.random.uniform(keys[ki], (dout,), jnp.float32); ki += 1
            scale = gamma / jnp.sqrt(rvar + eps)
            shift = beta - rmean * scale
            w_eff = w.T * scale[None, :]        # (din, dout)
            b_eff = b * scale + shift
        else:
            ki += 4
            w_eff = w.T
            b_eff = b
        ws.append(w_eff)
        bs.append(b_eff.reshape(1, dout))

    # Fold the identity into the final bias (x.view(-1,3,3) + I).
    bs[5] = bs[5] + jnp.eye(3, dtype=jnp.float32).reshape(1, 9)

    # bf16 weights for all big MXU matmuls (f32 accumulation in-kernel).
    for i in (1, 2, 3, 4):
        ws[i] = ws[i].astype(jnp.bfloat16)

    return dict(w1=ws[0], b1=bs[0], w2=ws[1], b2=bs[1], w3=ws[2], b3=bs[2],
                w4=ws[3], b4=bs[3], w5=ws[4], b5=bs[4], w6=ws[5], b6=bs[5])


def stn3d_reference(x_ncw, p):
    """Pure-JAX f32 reference (bf16-quantized weights upcast; f32 activations).
    Computes the pool in the original PyTorch order (ReLU before max), which
    validates the kernel's deferred-bias/ReLU identity."""
    x = jnp.transpose(x_ncw, (0, 2, 1)).astype(jnp.float32)
    h = jax.nn.relu(x @ p['w1'] + p['b1'])
    h = jax.nn.relu(h @ p['w2'].astype(jnp.float32) + p['b2'])
    h = jax.nn.relu(h @ p['w3'].astype(jnp.float32) + p['b3'])
    g = jnp.max(h, axis=1)
    f = jax.nn.relu(g @ p['w4'].astype(jnp.float32) + p['b4'])
    f = jax.nn.relu(f @ p['w5'].astype(jnp.float32) + p['b5'])
    f = f @ p['w6'] + p['b6']                 # b6 includes eye(3)
    return f.reshape(-1, 3, 3)


# ----------------------------------- Main ----------------------------------- #

if __name__ == "__main__":
    key = jax.random.PRNGKey(0)
    k_x, k_p = jax.random.split(key)

    B, C_in, N = 2, 3, 50                     # small shapes consistent with STN3d
    x = jax.random.normal(k_x, (B, C_in, N), jnp.float32)
    params = make_params(k_p, c_in=C_in)

    out = stn3d_forward(x, params)
    out = jax.block_until_ready(out)

    ref = stn3d_reference(x, params)
    assert out.shape == (B, 3, 3)
    assert jnp.allclose(out, ref, rtol=1e-2, atol=1e-2), "mismatch vs JAX reference"

    print("KERNEL_OK")
</pallas_src>

<mosaic_0001>
module attributes {stable_mosaic.version = 11 : i64} {
  func.func @stn3d_fused_kernel(%arg0: i32, %arg1: i32, %arg2: memref<2x56x8xf32, #tpu.memory_space<vmem>>, %arg3: memref<8x64xf32, #tpu.memory_space<vmem>>, %arg4: memref<1x64xf32, #tpu.memory_space<vmem>>, %arg5: memref<64x128xbf16, #tpu.memory_space<vmem>>, %arg6: memref<1x128xf32, #tpu.memory_space<vmem>>, %arg7: memref<128x1024xbf16, #tpu.memory_space<vmem>>, %arg8: memref<1x1024xf32, #tpu.memory_space<vmem>>, %arg9: memref<1024x512xbf16, #tpu.memory_space<vmem>>, %arg10: memref<1x512xf32, #tpu.memory_space<vmem>>, %arg11: memref<512x256xbf16, #tpu.memory_space<vmem>>, %arg12: memref<1x256xf32, #tpu.memory_space<vmem>>, %arg13: memref<256x9xf32, #tpu.memory_space<vmem>>, %arg14: memref<1x9xf32, #tpu.memory_space<vmem>>, %arg15: memref<2x9xf32, #tpu.memory_space<vmem>>, %arg16: memref<2x1024xf32, #tpu.memory_space<vmem>>) attributes {dimension_semantics = [#tpu.dimension_semantics<parallel>, #tpu.dimension_semantics<arbitrary>], iteration_bounds = array<i64: 1, 1>, scalar_prefetch = 0 : i64, scratch_operands = 1 : i64, tpu.core_type = #tpu.core_type<tc>, window_params = [{transform_indices = @transform_0, window_bounds = array<i64: 2, 56, 8>}, {pipeline_mode = #tpu.pipeline_mode<synchronous>, transform_indices = @transform_1, window_bounds = array<i64: 8, 64>}, {pipeline_mode = #tpu.pipeline_mode<synchronous>, transform_indices = @transform_2, window_bounds = array<i64: 1, 64>}, {pipeline_mode = #tpu.pipeline_mode<synchronous>, transform_indices = @transform_3, window_bounds = array<i64: 64, 128>}, {pipeline_mode = #tpu.pipeline_mode<synchronous>, transform_indices = @transform_4, window_bounds = array<i64: 1, 128>}, {pipeline_mode = #tpu.pipeline_mode<synchronous>, transform_indices = @transform_5, window_bounds = array<i64: 128, 1024>}, {pipeline_mode = #tpu.pipeline_mode<synchronous>, transform_indices = @transform_6, window_bounds = array<i64: 1, 1024>}, {pipeline_mode = #tpu.pipeline_mode<synchronous>, transform_indices = @transform_7, window_bounds = array<i64: 1024, 512>}, {pipeline_mode = #tpu.pipeline_mode<synchronous>, transform_indices = @transform_8, window_bounds = array<i64: 1, 512>}, {pipeline_mode = #tpu.pipeline_mode<synchronous>, transform_indices = @transform_9, window_bounds = array<i64: 512, 256>}, {pipeline_mode = #tpu.pipeline_mode<synchronous>, transform_indices = @transform_10, window_bounds = array<i64: 1, 256>}, {pipeline_mode = #tpu.pipeline_mode<synchronous>, transform_indices = @transform_11, window_bounds = array<i64: 256, 9>}, {pipeline_mode = #tpu.pipeline_mode<synchronous>, transform_indices = @transform_12, window_bounds = array<i64: 1, 9>}, {transform_indices = @transform_13, window_bounds = array<i64: 2, 9>}]} {
    %c0 = arith.constant 0 : index
    %c0_0 = arith.constant 0 : index
    %c0_1 = arith.constant 0 : index
    %0 = vector.load %arg2[%c0, %c0_0, %c0_1] : memref<2x56x8xf32, #tpu.memory_space<vmem>>, vector<2x56x8xf32>
    %1 = vector.shape_cast %0 : vector<2x56x8xf32> to vector<112x8xf32>
    %c0_2 = arith.constant 0 : index
    %c0_3 = arith.constant 0 : index
    %2 = vector.load %arg3[%c0_2, %c0_3] : memref<8x64xf32, #tpu.memory_space<vmem>>, vector<8x64xf32>
    %cst = arith.constant dense<0.000000e+00> : vector<112x64xf32>
    %3 = tpu.matmul %1, %2, %cst {dimension_numbers = #tpu.dot_dimension_numbers<[1], [0], [0], [1], [0, 0, 1, 1], [], []>} : vector<112x8xf32>, vector<8x64xf32>, vector<112x64xf32> -> vector<112x64xf32>
    %c0_4 = arith.constant 0 : index
    %c0_5 = arith.constant 0 : index
    %4 = vector.load %arg4[%c0_4, %c0_5] : memref<1x64xf32, #tpu.memory_space<vmem>>, vector<1x64xf32>
    %5 = vector.broadcast %4 : vector<1x64xf32> to vector<112x64xf32>
    %6 = arith.addf %3, %5 : vector<112x64xf32>
    %cst_6 = arith.constant 0.000000e+00 : f32
    %7 = vector.broadcast %cst_6 : f32 to vector<112x64xf32>
    %8 = arith.maximumf %6, %7 : vector<112x64xf32>
    %9 = arith.truncf %8 : vector<112x64xf32> to vector<112x64xbf16>
    %c0_7 = arith.constant 0 : index
    %c0_8 = arith.constant 0 : index
    %10 = vector.load %arg5[%c0_7, %c0_8] : memref<64x128xbf16, #tpu.memory_space<vmem>>, vector<64x128xbf16>
    %cst_9 = arith.constant dense<0.000000e+00> : vector<112x128xf32>
    %11 = tpu.matmul %9, %10, %cst_9 {dimension_numbers = #tpu.dot_dimension_numbers<[1], [0], [0], [1], [0, 0, 1, 1], [], []>} : vector<112x64xbf16>, vector<64x128xbf16>, vector<112x128xf32> -> vector<112x128xf32>
    %c0_10 = arith.constant 0 : index
    %c0_11 = arith.constant 0 : index
    %12 = vector.load %arg6[%c0_10, %c0_11] : memref<1x128xf32, #tpu.memory_space<vmem>>, vector<1x128xf32>
    %13 = vector.broadcast %12 : vector<1x128xf32> to vector<112x128xf32>
    %14 = arith.addf %11, %13 : vector<112x128xf32>
    %cst_12 = arith.constant 0.000000e+00 : f32
    %15 = vector.broadcast %cst_12 : f32 to vector<112x128xf32>
    %16 = arith.maximumf %14, %15 : vector<112x128xf32>
    %17 = arith.truncf %16 : vector<112x128xf32> to vector<112x128xbf16>
    %c0_13 = arith.constant 0 : index
    %c0_14 = arith.constant 0 : index
    %18 = vector.load %arg7[%c0_13, %c0_14] : memref<128x1024xbf16, #tpu.memory_space<vmem>>, vector<128x1024xbf16>
    %cst_15 = arith.constant dense<0.000000e+00> : vector<112x1024xf32>
    %19 = tpu.matmul %17, %18, %cst_15 {dimension_numbers = #tpu.dot_dimension_numbers<[1], [0], [0], [1], [0, 0, 1, 1], [], []>} : vector<112x128xbf16>, vector<128x1024xbf16>, vector<112x1024xf32> -> vector<112x1024xf32>
    %20 = vector.shape_cast %19 : vector<112x1024xf32> to vector<2x56x1024xf32>
    %cst_16 = arith.constant dense<0xFF800000> : vector<2x1024xf32>
    %21 = vector.multi_reduction <maximumf>, %20, %cst_16 [1] : vector<2x56x1024xf32> to vector<2x1024xf32>
    %c0_i32 = arith.constant 0 : i32
    %22 = arith.cmpi eq, %arg1, %c0_i32 : i32
    %23 = arith.extui %22 : i1 to i32
    %c0_i32_17 = arith.constant 0 : i32
    %24 = arith.cmpi ne, %23, %c0_i32_17 : i32
    scf.if %24 {
      %c0_22 = arith.constant 0 : index
      %c0_23 = arith.constant 0 : index
      %31 = vector.load %arg16[%c0_22, %c0_23] : memref<2x1024xf32, #tpu.memory_space<vmem>>, vector<2x1024xf32>
      tpu.vector_store %arg16[%c0_22, %c0_23], %21 {strides = array<i32>} : memref<2x1024xf32, #tpu.memory_space<vmem>>, vector<2x1024xf32>,
    } else {
    }
    %c0_i32_18 = arith.constant 0 : i32
    %25 = arith.cmpi ne, %arg1, %c0_i32_18 : i32
    %26 = arith.extui %25 : i1 to i32
    %c0_i32_19 = arith.constant 0 : i32
    %27 = arith.cmpi ne, %26, %c0_i32_19 : i32
    scf.if %27 {
      %c0_22 = arith.constant 0 : index
      %c0_23 = arith.constant 0 : index
      %31 = vector.load %arg16[%c0_22, %c0_23] : memref<2x1024xf32, #tpu.memory_space<vmem>>, vector<2x1024xf32>
      %32 = arith.maximumf %31, %21 : vector<2x1024xf32>
      %c0_24 = arith.constant 0 : index
      %c0_25 = arith.constant 0 : index
      %33 = vector.load %arg16[%c0_24, %c0_25] : memref<2x1024xf32, #tpu.memory_space<vmem>>, vector<2x1024xf32>
      tpu.vector_store %arg16[%c0_24, %c0_25], %32 {strides = array<i32>} : memref<2x1024xf32, #tpu.memory_space<vmem>>, vector<2x1024xf32>,
    } else {
    }
    %c0_i32_20 = arith.constant 0 : i32
    %28 = arith.cmpi eq, %arg1, %c0_i32_20 : i32
    %29 = arith.extui %28 : i1 to i32
    %c0_i32_21 = arith.constant 0 : i32
    %30 = arith.cmpi ne, %29, %c0_i32_21 : i32
    scf.if %30 {
      %c0_22 = arith.constant 0 : index
      %c0_23 = arith.constant 0 : index
      %31 = vector.load %arg16[%c0_22, %c0_23] : memref<2x1024xf32, #tpu.memory_space<vmem>>, vector<2x1024xf32>
      %c0_24 = arith.constant 0 : index
      %c0_25 = arith.constant 0 : index
      %32 = vector.load %arg8[%c0_24, %c0_25] : memref<1x1024xf32, #tpu.memory_space<vmem>>, vector<1x1024xf32>
      %33 = vector.broadcast %32 : vector<1x1024xf32> to vector<2x1024xf32>
      %34 = arith.addf %31, %33 : vector<2x1024xf32>
      %cst_26 = arith.constant 0.000000e+00 : f32
      %35 = vector.broadcast %cst_26 : f32 to vector<2x1024xf32>
      %36 = arith.maximumf %34, %35 : vector<2x1024xf32>
      %37 = arith.truncf %36 : vector<2x1024xf32> to vector<2x1024xbf16>
      %c0_27 = arith.constant 0 : index
      %c0_28 = arith.constant 0 : index
      %38 = vector.load %arg9[%c0_27, %c0_28] : memref<1024x512xbf16, #tpu.memory_space<vmem>>, vector<1024x512xbf16>
      %cst_29 = arith.constant dense<0.000000e+00> : vector<2x512xf32>
      %39 = tpu.matmul %37, %38, %cst_29 {dimension_numbers = #tpu.dot_dimension_numbers<[1], [0], [0], [1], [0, 0, 1, 1], [], []>} : vector<2x1024xbf16>, vector<1024x512xbf16>, vector<2x512xf32> -> vector<2x512xf32>
      %c0_30 = arith.constant 0 : index
      %c0_31 = arith.constant 0 : index
      %40 = vector.load %arg10[%c0_30, %c0_31] : memref<1x512xf32, #tpu.memory_space<vmem>>, vector<1x512xf32>
      %41 = vector.broadcast %40 : vector<1x512xf32> to vector<2x512xf32>
      %42 = arith.addf %39, %41 : vector<2x512xf32>
      %cst_32 = arith.constant 0.000000e+00 : f32
      %43 = vector.broadcast %cst_32 : f32 to vector<2x512xf32>
      %44 = arith.maximumf %42, %43 : vector<2x512xf32>
      %45 = arith.truncf %44 : vector<2x512xf32> to vector<2x512xbf16>
      %c0_33 = arith.constant 0 : index
      %c0_34 = arith.constant 0 : index
      %46 = vector.load %arg11[%c0_33, %c0_34] : memref<512x256xbf16, #tpu.memory_space<vmem>>, vector<512x256xbf16>
      %cst_35 = arith.constant dense<0.000000e+00> : vector<2x256xf32>
      %47 = tpu.matmul %45, %46, %cst_35 {dimension_numbers = #tpu.dot_dimension_numbers<[1], [0], [0], [1], [0, 0, 1, 1], [], []>} : vector<2x512xbf16>, vector<512x256xbf16>, vector<2x256xf32> -> vector<2x256xf32>
      %c0_36 = arith.constant 0 : index
      %c0_37 = arith.constant 0 : index
      %48 = vector.load %arg12[%c0_36, %c0_37] : memref<1x256xf32, #tpu.memory_space<vmem>>, vector<1x256xf32>
      %49 = vector.broadcast %48 : vector<1x256xf32> to vector<2x256xf32>
      %50 = arith.addf %47, %49 : vector<2x256xf32>
      %cst_38 = arith.constant 0.000000e+00 : f32
      %51 = vector.broadcast %cst_38 : f32 to vector<2x256xf32>
      %52 = arith.maximumf %50, %51 : vector<2x256xf32>
      %c0_39 = arith.constant 0 : index
      %c0_40 = arith.constant 0 : index
      %53 = vector.load %arg13[%c0_39, %c0_40] : memref<256x9xf32, #tpu.memory_space<vmem>>, vector<256x9xf32>
      %cst_41 = arith.constant dense<0.000000e+00> : vector<2x9xf32>
      %54 = tpu.matmul %52, %53, %cst_41 {dimension_numbers = #tpu.dot_dimension_numbers<[1], [0], [0], [1], [0, 0, 1, 1], [], []>} : vector<2x256xf32>, vector<256x9xf32>, vector<2x9xf32> -> vector<2x9xf32>
      %c0_42 = arith.constant 0 : index
      %c0_43 = arith.constant 0 : index
      %55 = vector.load %arg14[%c0_42, %c0_43] : memref<1x9xf32, #tpu.memory_space<vmem>>, vector<1x9xf32>
      %56 = vector.broadcast %55 : vector<1x9xf32> to vector<2x9xf32>
      %57 = arith.addf %54, %56 : vector<2x9xf32>
      %c0_44 = arith.constant 0 : index
      %c0_45 = arith.constant 0 : index
      %58 = vector.load %arg15[%c0_44, %c0_45] : memref<2x9xf32, #tpu.memory_space<vmem>>, vector<2x9xf32>
      tpu.vector_store %arg15[%c0_44, %c0_45], %57 {strides = array<i32>} : memref<2x9xf32, #tpu.memory_space<vmem>>, vector<2x9xf32>,
    } else {
    }
    return
  }
  func.func @transform_0(%arg0: i32, %arg1: i32) -> (i32, i32, i32) {
    %c0_i32 = arith.constant 0 : i32
    %c0_i32_0 = arith.constant 0 : i32
    return %arg0, %arg1, %c0_i32 : i32, i32, i32
  }
  func.func @transform_1(%arg0: i32, %arg1: i32) -> (i32, i32) {
    %c0_i32 = arith.constant 0 : i32
    %c0_i32_0 = arith.constant 0 : i32
    %c0_i32_1 = arith.constant 0 : i32
    return %c0_i32, %c0_i32_0 : i32, i32
  }
  func.func @transform_2(%arg0: i32, %arg1: i32) -> (i32, i32) {
    %c0_i32 = arith.constant 0 : i32
    %c0_i32_0 = arith.constant 0 : i32
    %c0_i32_1 = arith.constant 0 : i32
    return %c0_i32, %c0_i32_0 : i32, i32
  }
  func.func @transform_3(%arg0: i32, %arg1: i32) -> (i32, i32) {
    %c0_i32 = arith.constant 0 : i32
    %c0_i32_0 = arith.constant 0 : i32
    %c0_i32_1 = arith.constant 0 : i32
    return %c0_i32, %c0_i32_0 : i32, i32
  }
  func.func @transform_4(%arg0: i32, %arg1: i32) -> (i32, i32) {
    %c0_i32 = arith.constant 0 : i32
    %c0_i32_0 = arith.constant 0 : i32
    %c0_i32_1 = arith.constant 0 : i32
    return %c0_i32, %c0_i32_0 : i32, i32
  }
  func.func @transform_5(%arg0: i32, %arg1: i32) -> (i32, i32) {
    %c0_i32 = arith.constant 0 : i32
    %c0_i32_0 = arith.constant 0 : i32
    %c0_i32_1 = arith.constant 0 : i32
    return %c0_i32, %c0_i32_0 : i32, i32
  }
  func.func @transform_6(%arg0: i32, %arg1: i32) -> (i32, i32) {
    %c0_i32 = arith.constant 0 : i32
    %c0_i32_0 = arith.constant 0 : i32
    %c0_i32_1 = arith.constant 0 : i32
    return %c0_i32, %c0_i32_0 : i32, i32
  }
  func.func @transform_7(%arg0: i32, %arg1: i32) -> (i32, i32) {
    %c0_i32 = arith.constant 0 : i32
    %c0_i32_0 = arith.constant 0 : i32
    %c0_i32_1 = arith.constant 0 : i32
    return %c0_i32, %c0_i32_0 : i32, i32
  }
  func.func @transform_8(%arg0: i32, %arg1: i32) -> (i32, i32) {
    %c0_i32 = arith.constant 0 : i32
    %c0_i32_0 = arith.constant 0 : i32
    %c0_i32_1 = arith.constant 0 : i32
    return %c0_i32, %c0_i32_0 : i32, i32
  }
  func.func @transform_9(%arg0: i32, %arg1: i32) -> (i32, i32) {
    %c0_i32 = arith.constant 0 : i32
    %c0_i32_0 = arith.constant 0 : i32
    %c0_i32_1 = arith.constant 0 : i32
    return %c0_i32, %c0_i32_0 : i32, i32
  }
  func.func @transform_10(%arg0: i32, %arg1: i32) -> (i32, i32) {
    %c0_i32 = arith.constant 0 : i32
    %c0_i32_0 = arith.constant 0 : i32
    %c0_i32_1 = arith.constant 0 : i32
    return %c0_i32, %c0_i32_0 : i32, i32
  }
  func.func @transform_11(%arg0: i32, %arg1: i32) -> (i32, i32) {
    %c0_i32 = arith.constant 0 : i32
    %c0_i32_0 = arith.constant 0 : i32
    %c0_i32_1 = arith.constant 0 : i32
    return %c0_i32, %c0_i32_0 : i32, i32
  }
  func.func @transform_12(%arg0: i32, %arg1: i32) -> (i32, i32) {
    %c0_i32 = arith.constant 0 : i32
    %c0_i32_0 = arith.constant 0 : i32
    %c0_i32_1 = arith.constant 0 : i32
    return %c0_i32, %c0_i32_0 : i32, i32
  }
  func.func @transform_13(%arg0: i32, %arg1: i32) -> (i32, i32) {
    %c0_i32 = arith.constant 0 : i32
    %c0_i32_0 = arith.constant 0 : i32
    return %arg0, %c0_i32 : i32, i32
  }
}

</mosaic_0001>

<bundles_post_ra>
// kernel: tpu_custom_call.1
= control target key start
LH: loop header
LB: loop body
LE: loop exit
PB: predicated region body
PF: predicated region fallthrough
CT: control target
= control target key end

     0   :  { %18 = vsyncpa [#allocation4], 0  ;;  %s6139_s0 = inlined_call_operand.vmem [shape: f32[2,56,8], index: 0, kind: input, shape index: {}]   ;;  %s6140_s1 = inlined_call_operand.vmem [shape: f32[8,64], index: 1, kind: input, shape index: {}]   ;;  %s6141_s2 = inlined_call_operand.vmem [shape: f32[1,64], index: 2, kind: input, shape index: {}]   ;;  %s6142_s3 = inlined_call_operand.vmem [shape: bf16[64,128], index: 3, kind: input, shape index: {}]   ;;  %s6143_s4 = inlined_call_operand.vmem [shape: f32[1,128], index: 4, kind: input, shape index: {}]   ;;  %s6144_s5 = inlined_call_operand.hbm [shape: bf16[128,1024], index: 5, kind: input, shape index: {}]   ;;  %s6145_s6 = inlined_call_operand.vmem [shape: f32[1,1024], index: 6, kind: input, shape index: {}]   ;;  %s6146_s7 = inlined_call_operand.hbm [shape: bf16[1024,512], index: 7, kind: input, shape index: {}]   ;;  %s6147_s8 = inlined_call_operand.vmem [shape: f32[1,512], index: 8, kind: input, shape index: {}]   ;;  %s6148_s9 = inlined_call_operand.hbm [shape: bf16[512,256], index: 9, kind: input, shape index: {}]   ;;  %s6149_s10 = inlined_call_operand.vmem [shape: f32[1,256], index: 10, kind: input, shape index: {}]   ;;  %s6150_s11 = inlined_call_operand.vmem [shape: f32[256,9], index: 11, kind: input, shape index: {}]   ;;  %s6151_s12 = inlined_call_operand.vmem [shape: f32[1,9], index: 12, kind: input, shape index: {}]   ;;  %s6152_s13 = inlined_call_operand.hbm [shape: f32[2,9], index: 13, kind: output, shape index: {}]  }
   0x1   :  { %19 = vsyncpa [#allocation7], 0 }
   0x2   :  { %20 = vsyncpa [#allocation5], 0  ;;  %s5533_s25 = smov [#allocation6]   ;;  %s5439_s29 = scalar_lea.hbm %s6146_s7, 32768 }
   0x3   :  { %s50_s26 = sshll.u32 %s5533_s25, 4  ;;  %p5440_p0 = scmp.ne.s32.totalorder %s6146_s7, %s5439_s29  ;;  %s51_s26 = int_to_ptr.vmem [resolvable:$true] %s50_s26 }
   0x4   :  { %p5443_p1 = scmp.lt.u32.totalorder %s5439_s29, %s6146_s7 }
   0x6   :  { %p5445_p2 = pnand %p5443_p1, %p5440_p0 }
   0x8   :  { %5448 = shalt.err (!%p5445_p2)
}
   0x9   :  { %s5449_s17 = scalar_lea.vmem %s51_s26, 32768  ;;  %p5454_p4 = scmp.lt.s32.totalorder %s51_s26, %s51_s26 }
   0xa   :  { %p5450_p3 = scmp.ne.s32.totalorder %s51_s26, %s5449_s17  ;;  %p5455_p5 = scmp.lt.s32.totalorder %s5449_s17, %s5449_s17 }
   0xc   :  { %p5456_p6 = por %p5455_p5, %p5454_p4 }
   0xe   :  { %p5457_p7 = pnand %p5456_p6, %p5450_p3 }
  0x10   :  { %5460 = shalt.err (!%p5457_p7)
}
  0x11   :  { %s5534_s18 = smov 256   ;;  %s5535_s19 = smov 16  }
  0x12   :  { %56 = dma.hbm_to_vmem [thread:$0]  %s6146_s7, 32768, %s51_s26, [#allocation7], %s5534_s18, %s5534_s18, %s5535_s19  }
  0x13   :  { %s5536_s22 = smov [#allocation3]   ;;  %s5461_s27 = scalar_lea.hbm %s6144_s5, 8192 }
  0x14   :  { %s36_s23 = sshll.u32 %s5536_s22, 4  ;;  %p5462_p8 = scmp.ne.s32.totalorder %s6144_s5, %s5461_s27  ;;  %s37_s23 = int_to_ptr.vmem [resolvable:$true] %s36_s23 }
  0x15   :  { %p5465_p9 = scmp.lt.u32.totalorder %s5461_s27, %s6144_s5 }
  0x17   :  { %p5467_p10 = pnand %p5465_p9, %p5462_p8 }
  0x19   :  { %5470 = shalt.err (!%p5467_p10)
}
  0x1a   :  { %s5471_s15 = scalar_lea.vmem %s37_s23, 8192  ;;  %p5476_p12 = scmp.lt.s32.totalorder %s37_s23, %s37_s23 }
  0x1b   :  { %p5472_p11 = scmp.ne.s32.totalorder %s37_s23, %s5471_s15  ;;  %p5477_p13 = scmp.lt.s32.totalorder %s5471_s15, %s5471_s15 }
  0x1d   :  { %p5478_p0 = por %p5477_p13, %p5476_p12 }
  0x1f   :  { %p5479_p1 = pnand %p5478_p0, %p5472_p11 }
  0x21   :  { %5482 = shalt.err (!%p5479_p1)
}
  0x22   :  { %s5537_s7 = smov 512   ;;  %s5538_s26 = smov 32  }
  0x23   :  { %42 = dma.hbm_to_vmem [thread:$0]  %s6144_s5, 8192, %s37_s23, [#allocation4], %s5537_s7, %s5537_s7, %s5538_s26  }
  0x24   :  { %s5539_s18 = smov [#allocation8]   ;;  %s5483_s22 = scalar_lea.hbm %s6148_s9, 8192 }
  0x25   :  { %s64_s19 = sshll.u32 %s5539_s18, 4  ;;  %p5484_p2 = scmp.ne.s32.totalorder %s6148_s9, %s5483_s22  ;;  %s65_s19 = int_to_ptr.vmem [resolvable:$true] %s64_s19 }
  0x26   :  { %p5487_p3 = scmp.lt.u32.totalorder %s5483_s22, %s6148_s9 }
  0x28   :  { %p5489_p4 = pnand %p5487_p3, %p5484_p2 }
  0x2a   :  { %5492 = shalt.err (!%p5489_p4)
}
  0x2b   :  { %s5493_s29 = scalar_lea.vmem %s65_s19, 8192  ;;  %p5498_p6 = scmp.lt.s32.totalorder %s65_s19, %s65_s19 }
  0x2c   :  { %p5494_p5 = scmp.ne.s32.totalorder %s65_s19, %s5493_s29  ;;  %p5499_p7 = scmp.lt.s32.totalorder %s5493_s29, %s5493_s29 }
  0x2e   :  { %p5500_p8 = por %p5499_p7, %p5498_p6 }
  0x30   :  { %p5501_p9 = pnand %p5500_p8, %p5494_p5 }
  0x32   :  { %5504 = shalt.err (!%p5501_p9)
}
  0x33   :  { %s5540_s5 = smov 128   ;;  %s5541_s23 = smov 8  }
  0x34   :  { %70 = dma.hbm_to_vmem [thread:$0]  %s6148_s9, 8192, %s65_s19, [#allocation7], %s5540_s5, %s5540_s5, %s5541_s23  }
  0x35   :  { %5527 = dma.done.wait [#allocation4], 8192  }
  0x36   :  { %5528 = vsyncadd [#allocation4], 4294959104 }
  0x37   :  { %5529 = dma.done.wait [#allocation7], 40960  }
  0x38   :  { %5530 = vsyncadd [#allocation7], 4294926336  ;;  %v5542_v0 = vmov 0.0   ;;  %vm109_vm0 = vcmask 64512   ;;  %v101_v1 = vld [vmem:[%s6140_s1] sm:$0xff]  ;;  %v88_v3 = vld [vmem:[%s6139_s0 + $0x8] sm:$0xff] }
  0x39   :  { %4823 = vmatprep.subr.bf16.mxu1 %v5542_v0  ;;  %v87_v2 = vld [vmem:[%s6139_s0] sm:$0xff]  ;;  %4800 = vmatprep.subr.mxu0 %v101_v1  ;;  %v89_v4 = vld [vmem:[%s6139_s0 + $0x10] sm:$0xff]  ;;  %v90_v5 = vld [vmem:[%s6139_s0 + $0x18] sm:$0xff]  ;;  %vm5543_vm1 = vmmov 0   ;;  %vm347_vm2 = vcmask 523264   ;;  %vm1560_vm3 = vcmask 1041409  }
  0x3a   :  { %4802 = vmatprep.mubr.msk.f32.mxu0 %vm109_vm0, %v87_v2  ;;  %4801 = vmatpush3.msra.mxu0 %v101_v1  ;;  %v91_v6 = vld [vmem:[%s6139_s0 + $0x20] sm:$0xff]  ;;  %v92_v8 = vld [vmem:[%s6139_s0 + $0x28] sm:$0xff]  ;;  %v93_v10 = vld [vmem:[%s6139_s0 + $0x30] sm:$0xff]  ;;  %vm1562_vm4 = vcmask 1043459   ;;  %vm1564_vm5 = vcmask 1045509   ;;  %vm1566_vm6 = vcmask 1047559  }
  0x3b   :  { %4803 = vmatmul.mubr.msk.f32.vlgmr.msra.gmra.mrb[0].mxu0 %vm109_vm0, %v88_v3  ;;  %v4955_v7 = vld [vmem:[%s6142_s3] sm:$0xff]   ;;  %v4956_v9 = vld [vmem:[%s6142_s3 + $0x8] sm:$0xff]   ;;  %v94_v11 = vld [vmem:[%s6139_s0 + $0x38] sm:$0xff]  ;;  %4831 = vmatprep.mubr.msk.bf16.mxu1 %vm5543_vm1, %v5542_v0  ;;  %vm4309_vm7 = vcmask 66560  }
  0x3c   :  { %4805 = vmatprep.mubr.msk.f32.mxu0 %vm109_vm0, %v89_v4  ;;  %4824 = vmatpush3.bf16.msra.mxu1 %v4955_v7  ;;  %v95_v12 = vld [vmem:[%s6139_s0 + $0x40] sm:$0xff]  ;;  %v96_v13 = vld [vmem:[%s6139_s0 + $0x48] sm:$0xff]  ;;  %v97_v14 = vld [vmem:[%s6139_s0 + $0x50] sm:$0xff] }
  0x3d   :  { %4825 = vmatprep.subr.bf16.mxu1 %v5542_v0  ;;  %v98_v15 = vld [vmem:[%s6139_s0 + $0x58] sm:$0xff]  ;;  %v99_v16 = vld [vmem:[%s6139_s0 + $0x60] sm:$0xff]  ;;  %v100_v17 = vld [vmem:[%s6139_s0 + $0x68] sm:$0xff] }
  0x3e   :  { %v4957_v18 = vld [vmem:[%s6142_s3 + $0x10] sm:$0xff]   ;;  %v4958_v19 = vld [vmem:[%s6142_s3 + $0x18] sm:$0xff]   ;;  %v4327_v44 = vld [vmem:[%s6141_s2] ss:$0 sm:$0xff] }
  0x3f   :  { %4806 = vmatmul.mubr.msk.f32.gmra.mrb[2].mxu0 %vm109_vm0, %v90_v5  ;;  %v479_v20 = vld [vmem:[#allocation3] sm:$0xff] }
  0x40   :  { %4808 = vmatprep.mubr.msk.f32.mxu0 %vm109_vm0, %v91_v6  ;;  %4826 = vmatpush3.bf16.msra.mxu1 %v4956_v9  ;;  %v483_v21 = vld [vmem:[#allocation3 + $0x20] sm:$0xff] }
  0x41   :  { %4827 = vmatprep.subr.bf16.mxu1 %v5542_v0  ;;  %v487_v22 = vld [vmem:[#allocation3 + $0x40] sm:$0xff]  ;;  %v4354_v23 = vcombine.low %v479_v20, %v483_v21  ;;  %v4355_v24 = vcombine.high %v479_v20, %v483_v21 }
  0x42   :  { %v491_v25 = vld [vmem:[#allocation3 + $0x60] sm:$0xff] }
  0x43   :  { %4809 = vmatmul.mubr.msk.f32.gmra.mrb[4].mxu0 %vm109_vm0, %v92_v8  ;;  %v4363_v26 = vcombine.high %v487_v22, %v491_v25  ;;  %v495_v27 = vld [vmem:[#allocation3 + $0x80] sm:$0xff]  ;;  %863 = vmatprep.subr.bf16.mxu0 %v4355_v24  ;;  %v4362_v29 = vcombine.low %v487_v22, %v491_v25 }
  0x44   :  { %4811 = vmatprep.mubr.msk.f32.mxu0 %vm109_vm0, %v93_v10  ;;  %4828 = vmatpush3.bf16.msra.mxu1 %v4957_v18  ;;  %v499_v28 = vld [vmem:[#allocation3 + $0xa0] sm:$0xff] }
  0x45   :  { %4829 = vmatprep.subr.bf16.mxu1 %v5542_v0  ;;  %864 = vmatpush1.bf16.msra.mxu0 %v4354_v23  ;;  %v4371_v30 = vcombine.high %v495_v27, %v499_v28  ;;  %v503_v31 = vld [vmem:[#allocation3 + $0xc0] sm:$0xff]  ;;  %v4370_v33 = vcombine.low %v495_v27, %v499_v28 }
  0x46   :  { %865 = vmatprep.subr.bf16.mxu0 %v4363_v26  ;;  %v507_v32 = vld [vmem:[#allocation3 + $0xe0] sm:$0xff] }
  0x47   :  { %4812 = vmatmul.mubr.msk.f32.gmra.mrb[6].mxu0 %vm109_vm0, %v94_v11  ;;  %v4379_v34 = vcombine.high %v503_v31, %v507_v32  ;;  %v511_v35 = vld [vmem:[#allocation3 + $0x100] sm:$0xff]  ;;  %v4378_v37 = vcombine.low %v503_v31, %v507_v32 }
  0x48   :  { %4814 = vmatprep.mubr.msk.f32.mxu0 %vm109_vm0, %v95_v12  ;;  %4830 = vmatpush3.bf16.msra.mxu1 %v4958_v19  ;;  %v515_v36 = vld [vmem:[#allocation3 + $0x120] sm:$0xff] }
  0x49   :  { %4891 = vmatprep.subr.bf16.mxu1 %v4355_v24  ;;  %866 = vmatpush1.bf16.msra.mxu0 %v4362_v29  ;;  %v5730_v38 = vcombine.high %v511_v35, %v515_v36  ;;  %v519_v39 = vld [vmem:[#allocation3 + $0x140] sm:$0xff]  ;;  %v5732_v41 = vcombine.low %v511_v35, %v515_v36 }
  0x4a   :  { %867 = vmatprep.subr.bf16.mxu0 %v4371_v30  ;;  %v523_v40 = vld [vmem:[#allocation3 + $0x160] sm:$0xff] }
  0x4b   :  { %4815 = vmatmul.mubr.msk.f32.gmra.mrb[8].mxu0 %vm109_vm0, %v96_v13  ;;  %v5735_v42 = vcombine.high %v519_v39, %v523_v40  ;;  %v5738_v43 = vcombine.low %v519_v39, %v523_v40  ;;  %v527_v31 = vld [vmem:[#allocation3 + $0x180] sm:$0xff]  ;;  %v481_v39 = vld [vmem:[#allocation3 + $0x10] sm:$0xff] }
  0x4c   :  { %4817 = vmatprep.mubr.msk.f32.mxu0 %vm109_vm0, %v97_v14  ;;  %v531_v32 = vld [vmem:[#allocation3 + $0x1a0] sm:$0xff]  ;;  %v485_v40 = vld [vmem:[#allocation3 + $0x30] sm:$0xff] }
  0x4d   :  { %868 = vmatpush1.bf16.msra.mxu0 %v4370_v33  ;;  %v535_v35 = vld [vmem:[#allocation3 + $0x1c0] sm:$0xff] }
  0x4e   :  { %869 = vmatprep.subr.bf16.mxu0 %v4379_v34  ;;  %v539_v36 = vld [vmem:[#allocation3 + $0x1e0] sm:$0xff] }
  0x4f   :  { %4818 = vmatmul.mubr.msk.f32.gmra.mrb[10].mxu0 %vm109_vm0, %v98_v15 }
  0x50   :  { %4820 = vmatprep.mubr.msk.f32.mxu0 %vm109_vm0, %v99_v16 }
  0x51   :  { %870 = vmatpush1.bf16.msra.mxu0 %v4378_v37 }
  0x52   :  { %871 = vmatprep.subr.bf16.mxu0 %v5730_v38 }
  0x53   :  { %4821 = vmatmul.mubr.msk.f32.gmra.mrb[12].mxu0 %vm109_vm0, %v100_v17 }
  0x55   :  { %872 = vmatpush1.bf16.msra.mxu0 %v5732_v41 }
  0x56   :  { %873 = vmatprep.subr.bf16.mxu0 %v5735_v42 }
  0x59   :  { %874 = vmatpush1.bf16.msra.mxu0 %v5738_v43 }
 0x10e   :  { %v4804_v45 = vpop.f32.mrb[0].mxu0 }
 0x10f   :  { %v224_v46 = vadd.f32 %v4804_v45, %v4327_v44  ;;  %v218_v47 = vpop.f32.mrb[1].mxu0 }
 0x110   :  { %v219_v48 = vadd.f32 %v4327_v44, %v218_v47  ;;  %v5781_v47 = vld [vmem:[%s6143_s4] ss:$0 sm:$0xff] }
 0x111   :  { %v288_v49 = vmax.f32 %v224_v46, 0.0 }
 0x112   :  { %v287_v50 = vmax.f32 %v219_v48, 0.0  ;;  %v4807_v51 = vpop.f32.mrb[2].mxu0 }
 0x113   :  { %v234_v52 = vadd.f32 %v4807_v51, %v4327_v44  ;;  %v228_v53 = vpop.f32.mrb[3].mxu0 }
 0x114   :  { %v301_v54 = vpack.c.bf16 %v288_v49, %v287_v50  ;;  %v229_v55 = vadd.f32 %v4327_v44, %v228_v53 }
 0x115   :  { %v290_v56 = vmax.f32 %v234_v52, 0.0 }
 0x116   :  { %v289_v57 = vmax.f32 %v229_v55, 0.0  ;;  %4832 = vmatmul.mubr.msk.bf16.vlgmr.msra.gmra.mrb[0].mxu1 %vm347_vm2, %v301_v54  ;;  %v4810_v58 = vpop.f32.mrb[4].mxu0  ;;  %v489_v54 = vld [vmem:[#allocation3 + $0x50] sm:$0xff] }
 0x117   :  { %v244_v59 = vadd.f32 %v4810_v58, %v4327_v44  ;;  %4835 = vmatprep.mubr.msk.bf16.mxu1 %vm5543_vm1, %v5542_v0  ;;  %v238_v60 = vpop.f32.mrb[5].mxu0  ;;  %4899 = vmatpush1.bf16.msra.mxu1 %v4354_v23  ;;  %v493_v55 = vld [vmem:[#allocation3 + $0x70] sm:$0xff] }
 0x118   :  { %v302_v61 = vpack.c.bf16 %v290_v56, %v289_v57  ;;  %v239_v62 = vadd.f32 %v4327_v44, %v238_v60  ;;  %4892 = vmatprep.subr.bf16.mxu1 %v4363_v26 }
 0x119   :  { %v292_v63 = vmax.f32 %v244_v59, 0.0  ;;  %v4367_v59 = vcombine.high %v489_v54, %v493_v55 }
 0x11a   :  { %v291_v1 = vmax.f32 %v239_v62, 0.0  ;;  %v4813_v2 = vpop.f32.mrb[6].mxu0  ;;  %v501_v62 = vld [vmem:[#allocation3 + $0xb0] sm:$0xff] }
 0x11b   :  { %v254_v3 = vadd.f32 %v4813_v2, %v4327_v44  ;;  %v248_v4 = vpop.f32.mrb[7].mxu0  ;;  %4900 = vmatpush1.bf16.msra.mxu1 %v4362_v29 }
 0x11c   :  { %v303_v5 = vpack.c.bf16 %v292_v63, %v291_v1  ;;  %v249_v6 = vadd.f32 %v4327_v44, %v248_v4  ;;  %4893 = vmatprep.subr.bf16.mxu1 %v4371_v30 }
 0x11d   :  { %v294_v7 = vmax.f32 %v254_v3, 0.0  ;;  %v4366_v3 = vcombine.low %v489_v54, %v493_v55 }
 0x11e   :  { %4836 = vmatmul.mubr.msk.bf16.gmra.mrb[4].mxu1 %vm347_vm2, %v302_v61  ;;  %v293_v8 = vmax.f32 %v249_v6, 0.0  ;;  %v4816_v9 = vpop.f32.mrb[8].mxu0  ;;  %v497_v61 = vld [vmem:[#allocation3 + $0x90] sm:$0xff] }
 0x11f   :  { %4839 = vmatprep.mubr.msk.bf16.mxu1 %vm5543_vm1, %v5542_v0  ;;  %v264_v10 = vadd.f32 %v4816_v9, %v4327_v44  ;;  %v258_v11 = vpop.f32.mrb[9].mxu0  ;;  %4901 = vmatpush1.bf16.msra.mxu1 %v4370_v33  ;;  %v4403_v33 = vcombine.high %v527_v31, %v531_v32  ;;  %v4375_v6 = vcombine.high %v497_v61, %v501_v62 }
 0x120   :  { %v304_v12 = vpack.c.bf16 %v294_v7, %v293_v8  ;;  %v259_v13 = vadd.f32 %v4327_v44, %v258_v11  ;;  %4894 = vmatprep.subr.bf16.mxu1 %v4379_v34  ;;  %v4402_v34 = vcombine.low %v527_v31, %v531_v32  ;;  %v505_v7 = vld [vmem:[#allocation3 + $0xd0] sm:$0xff]  ;;  %v4374_v11 = vcombine.low %v497_v61, %v501_v62  ;;  %v492_v61 = vld [vmem:[#allocation3 + $0x68] sm:$0xff] }
 0x121   :  { %v296_v14 = vmax.f32 %v264_v10, 0.0  ;;  %875 = vmatprep.subr.bf16.mxu0 %v4403_v33  ;;  %v509_v8 = vld [vmem:[#allocation3 + $0xf0] sm:$0xff] }
 0x122   :  { %v295_v15 = vmax.f32 %v259_v13, 0.0  ;;  %v4819_v16 = vpop.f32.mrb[10].mxu0  ;;  %876 = vmatpush1.bf16.msra.mxu0 %v4402_v34  ;;  %v4383_v13 = vcombine.high %v505_v7, %v509_v8  ;;  %v529_v32 = vld [vmem:[#allocation3 + $0x190] sm:$0xff] }
 0x123   :  { %v274_v17 = vadd.f32 %v4819_v16, %v4327_v44  ;;  %v268_v18 = vpop.f32.mrb[11].mxu0  ;;  %4902 = vmatpush1.bf16.msra.mxu1 %v4378_v37  ;;  %v4411_v37 = vcombine.high %v535_v35, %v539_v36  ;;  %v517_v16 = vld [vmem:[#allocation3 + $0x130] sm:$0xff] }
 0x124   :  { %v305_v19 = vpack.c.bf16 %v296_v14, %v295_v15  ;;  %v269_v20 = vadd.f32 %v4327_v44, %v268_v18  ;;  %4895 = vmatprep.subr.bf16.mxu1 %v5730_v38  ;;  %v4410_v38 = vcombine.low %v535_v35, %v539_v36  ;;  %v513_v15 = vld [vmem:[#allocation3 + $0x110] sm:$0xff] }
 0x125   :  { %v298_v21 = vmax.f32 %v274_v17, 0.0  ;;  %877 = vmatprep.subr.bf16.mxu0 %v4411_v37 }
 0x126   :  { %4840 = vmatmul.mubr.msk.bf16.gmra.mrb[8].mxu1 %vm347_vm2, %v303_v5  ;;  %v297_v22 = vmax.f32 %v269_v20, 0.0  ;;  %v4822_v23 = vpop.f32.mrb[12].mxu0  ;;  %878 = vmatpush1.bf16.msra.mxu0 %v4410_v38  ;;  %v4382_v20 = vcombine.low %v505_v7, %v509_v8 }
 0x127   :  { %4843 = vmatprep.mubr.msk.bf16.mxu1 %vm5543_vm1, %v5542_v0  ;;  %v284_v24 = vadd.f32 %v4822_v23, %v4327_v44  ;;  %v278_v25 = vpop.f32.mrb[13].mxu0  ;;  %4903 = vmatpush1.bf16.msra.mxu1 %v5732_v41  ;;  %v5544_v41 = vmov 0   ;;  %v4391_v23 = vcombine.high %v513_v15, %v517_v16 }
 0x128   :  { %v306_v26 = vpack.c.bf16 %v298_v21, %v297_v22  ;;  %v279_v27 = vadd.f32 %v4327_v44, %v278_v25  ;;  %4896 = vmatprep.subr.bf16.mxu1 %v5735_v42  ;;  %895 = vmatprep.mubr.bf16.mxu0 %v5544_v41  ;;  %v4358_v42 = vcombine.low %v481_v39, %v485_v40  ;;  %v5772_v44 = vld [vmem:[#allocation3 + $0x28] sm:$0xff]  ;;  %v525_v25 = vld [vmem:[#allocation3 + $0x170] sm:$0xff] }
 0x129   :  { %v300_v28 = vmax.f32 %v284_v24, 0.0  ;;  %v521_v24 = vld [vmem:[#allocation3 + $0x150] sm:$0xff] }
 0x12a   :  { %v299_v29 = vmax.f32 %v279_v27, 0.0 }
 0x12b   :  { %4904 = vmatpush1.bf16.msra.mxu1 %v5738_v43  ;;  %v5770_v43 = vld [vmem:[#allocation3 + $0x8] sm:$0xff] }
 0x12c   :  { %v307_v30 = vpack.c.bf16 %v300_v28, %v299_v29  ;;  %4897 = vmatprep.subr.bf16.mxu1 %v4403_v33  ;;  %v4357_v45 = vcombine.high %v5770_v43, %v5772_v44  ;;  %v4356_v46 = vcombine.low %v5770_v43, %v5772_v44  ;;  %v4390_v28 = vcombine.low %v513_v15, %v517_v16  ;;  %v533_v33 = vld [vmem:[#allocation3 + $0x1b0] sm:$0xff]  ;;  %v504_v15 = vld [vmem:[#allocation3 + $0xc8] sm:$0xff] }
 0x12d   :  { %v508_v16 = vld [vmem:[#allocation3 + $0xe8] sm:$0xff] }
 0x12e   :  { %4844 = vmatmul.mubr.msk.bf16.gmra.mrb[12].mxu1 %vm347_vm2, %v304_v12  ;;  %v4381_v43 = vcombine.high %v504_v15, %v508_v16 }
 0x12f   :  { %4847 = vmatprep.mubr.msk.bf16.mxu1 %vm5543_vm1, %v5542_v0  ;;  %4905 = vmatpush1.bf16.msra.mxu1 %v4402_v34 }
 0x130   :  { %4898 = vmatprep.subr.bf16.mxu1 %v4411_v37  ;;  %v4398_v37 = vcombine.low %v521_v24, %v525_v25 }
 0x133   :  { %4906 = vmatpush1.bf16.msra.mxu1 %v4410_v38 }
 0x134   :  { %966 = vmatprep.subr.bf16.mxu1 %v4357_v45 }
 0x136   :  { %4848 = vmatmul.mubr.msk.bf16.gmra.mrb[16].mxu1 %vm347_vm2, %v305_v19 }
 0x137   :  { %4851 = vmatprep.mubr.msk.bf16.mxu1 %vm5543_vm1, %v5542_v0 }
 0x13e   :  { %4852 = vmatmul.mubr.msk.bf16.gmra.mrb[20].mxu1 %vm347_vm2, %v306_v26 }
 0x13f   :  { %4855 = vmatprep.mubr.msk.bf16.mxu1 %vm5543_vm1, %v5542_v0  ;;  %v4359_v0 = vcombine.high %v481_v39, %v485_v40  ;;  %v4407_v40 = vcombine.high %v529_v32, %v533_v33 }
 0x141   :  { %1069 = vmatprep.subr.bf16.mxu0 %v4359_v0  ;;  %v537_v0 = vld [vmem:[#allocation3 + $0x1d0] sm:$0xff] }
 0x146   :  { %4856 = vmatmul.mubr.msk.bf16.gmra.mrb[24].mxu1 %vm347_vm2, %v307_v30  ;;  %v4399_v30 = vcombine.high %v521_v24, %v525_v25  ;;  %v4380_v24 = vcombine.low %v504_v15, %v508_v16  ;;  %v538_v16 = vld [vmem:[#allocation3 + $0x1d8] sm:$0xff] }
 0x147   :  { %935 = vmatprep.mubr.bf16.mxu1 %v5544_v41 }
 0x1e9   :  { %v403_v48 = vpop.f32.mrb[0].mxu1 }
 0x1ea   :  { %v404_v49 = vadd.f32 %v5781_v47, %v403_v48  ;;  %v4833_v50 = vpop.f32.mrb[1].mxu1 }
 0x1eb   :  { %v406_v51 = vpop.f32.mrb[2].mxu1 }
 0x1ec   :  { %v407_v52 = vadd.f32 %v5781_v47, %v406_v51  ;;  %v4834_v53 = vpop.f32.mrb[3].mxu1  ;;  %v458_v56 = vmax.f32 %v404_v49, 0.0  ;;  %v4406_v49 = vcombine.low %v529_v32, %v533_v33 }
 0x1ee   :  { %v459_v57 = vmax.f32 %v407_v52, 0.0 }
 0x1f0   :  { %v5785_v58 = vpack.c.bf16 %v459_v57, %v458_v56 }
 0x1f1   :  { %v411_v60 = vpop.f32.mrb[4].mxu1 }
 0x1f2   :  { %v412_v63 = vadd.f32 %v5781_v47, %v411_v60  ;;  %v4837_v1 = vpop.f32.mrb[5].mxu1  ;;  %896 = vmatmul.mubr.bf16.vlgmr.msra.gmra.mrb[16].mxu0 %v5785_v58  ;;  %v488_v60 = vld [vmem:[#allocation3 + $0x48] sm:$0xff] }
 0x1f3   :  { %v414_v2 = vpop.f32.mrb[6].mxu1  ;;  %1070 = vmatpush1.bf16.msra.mxu0 %v4358_v42  ;;  %905 = vmatprep.mubr.bf16.mxu0 %v5544_v41  ;;  %v541_v42 = vld [vmem:[#allocation3 + $0x1f0] sm:$0xff] }
 0x1f4   :  { %v415_v4 = vadd.f32 %v5781_v47, %v414_v2  ;;  %v4838_v5 = vpop.f32.mrb[7].mxu1  ;;  %1071 = vmatprep.subr.bf16.mxu0 %v4367_v59  ;;  %v460_v9 = vmax.f32 %v412_v63, 0.0  ;;  %v4415_v51 = vcombine.high %v537_v0, %v541_v42  ;;  %v4414_v56 = vcombine.low %v537_v0, %v541_v42 }
 0x1f5   :  { %v4365_v2 = vcombine.high %v488_v60, %v492_v61  ;;  %v500_v5 = vld [vmem:[#allocation3 + $0xa8] sm:$0xff] }
 0x1f6   :  { %v461_v10 = vmax.f32 %v415_v4, 0.0  ;;  %v496_v4 = vld [vmem:[#allocation3 + $0x88] sm:$0xff] }
 0x1f7   :  { %1072 = vmatpush1.bf16.msra.mxu0 %v4366_v3 }
 0x1f8   :  { %v5791_v12 = vpack.c.bf16 %v461_v10, %v460_v9  ;;  %1073 = vmatprep.subr.bf16.mxu0 %v4375_v6  ;;  %v4364_v9 = vcombine.low %v488_v60, %v492_v61  ;;  %v506_v61 = vld [vmem:[#allocation3 + $0xd8] sm:$0xff] }
 0x1f9   :  { %v419_v14 = vpop.f32.mrb[8].mxu1 }
 0x1fa   :  { %v420_v17 = vadd.f32 %v5781_v47, %v419_v14  ;;  %v4841_v18 = vpop.f32.mrb[9].mxu1  ;;  %906 = vmatmul.mubr.bf16.gmra.mrb[20].mxu0 %v5791_v12  ;;  %v4373_v14 = vcombine.high %v496_v4, %v500_v5 }
 0x1fb   :  { %v422_v19 = vpop.f32.mrb[10].mxu1  ;;  %1074 = vmatpush1.bf16.msra.mxu0 %v4374_v11  ;;  %915 = vmatprep.mubr.bf16.mxu0 %v5544_v41  ;;  %v4372_v18 = vcombine.low %v496_v4, %v500_v5  ;;  %v518_v4 = vld [vmem:[#allocation3 + $0x138] sm:$0xff] }
 0x1fc   :  { %v423_v21 = vadd.f32 %v5781_v47, %v422_v19  ;;  %v4842_v22 = vpop.f32.mrb[11].mxu1  ;;  %1075 = vmatprep.subr.bf16.mxu0 %v4383_v13  ;;  %v462_v26 = vmax.f32 %v420_v17, 0.0 }
 0x1fe   :  { %v463_v27 = vmax.f32 %v423_v21, 0.0 }
 0x1ff   :  { %1076 = vmatpush1.bf16.msra.mxu0 %v4382_v20  ;;  %v516_v20 = vld [vmem:[#allocation3 + $0x128] sm:$0xff] }
 0x200   :  { %v5797_v29 = vpack.c.bf16 %v463_v27, %v462_v26  ;;  %1077 = vmatprep.subr.bf16.mxu0 %v4391_v23 }
 0x201   :  { %v427_v31 = vpop.f32.mrb[12].mxu1 }
 0x202   :  { %v428_v34 = vadd.f32 %v5781_v47, %v427_v31  ;;  %v4845_v35 = vpop.f32.mrb[13].mxu1  ;;  %916 = vmatmul.mubr.bf16.gmra.mrb[24].mxu0 %v5797_v29  ;;  %v524_v31 = vld [vmem:[#allocation3 + $0x168] sm:$0xff] }
 0x203   :  { %v430_v36 = vpop.f32.mrb[14].mxu1  ;;  %1078 = vmatpush1.bf16.msra.mxu0 %v4390_v28  ;;  %925 = vmatprep.mubr.bf16.mxu0 %v5544_v41 }
 0x204   :  { %v431_v38 = vadd.f32 %v5781_v47, %v430_v36  ;;  %v4846_v39 = vpop.f32.mrb[15].mxu1  ;;  %1079 = vmatprep.subr.bf16.mxu0 %v4399_v30  ;;  %v464_v45 = vmax.f32 %v428_v34, 0.0  ;;  %v520_v30 = vld [vmem:[#allocation3 + $0x148] sm:$0xff] }
 0x205   :  { %v4397_v35 = vcombine.high %v520_v30, %v524_v31  ;;  %v528_v36 = vld [vmem:[#allocation3 + $0x188] sm:$0xff] }
 0x206   :  { %v465_v48 = vmax.f32 %v431_v38, 0.0  ;;  %v536_v39 = vld [vmem:[#allocation3 + $0x1c8] sm:$0xff] }
 0x207   :  { %1080 = vmatpush1.bf16.msra.mxu0 %v4398_v37  ;;  %v532_v37 = vld [vmem:[#allocation3 + $0x1a8] sm:$0xff] }
 0x208   :  { %v5803_v50 = vpack.c.bf16 %v465_v48, %v464_v45  ;;  %1081 = vmatprep.subr.bf16.mxu0 %v4407_v40  ;;  %v4405_v38 = vcombine.high %v528_v36, %v532_v37  ;;  %v540_v40 = vld [vmem:[#allocation3 + $0x1e8] sm:$0xff]  ;;  %v4404_v0 = vcombine.low %v528_v36, %v532_v37  ;;  %v482_v45 = vld [vmem:[#allocation3 + $0x18] sm:$0xff]  ;;  %v4997_v37 = vld [vmem:[#allocation6 + $0xc4] ss:$16 sps:$4 sm:$0xff]  }
 0x209   :  { %v435_v52 = vpop.f32.mrb[16].mxu1  ;;  %v4413_v42 = vcombine.high %v536_v39, %v540_v40  ;;  %v486_v48 = vld [vmem:[#allocation3 + $0x38] sm:$0xff] }
 0x20a   :  { %v436_v53 = vadd.f32 %v5781_v47, %v435_v52  ;;  %v4849_v54 = vpop.f32.mrb[17].mxu1  ;;  %926 = vmatmul.mubr.bf16.gmra.mrb[28].mxu0 %v5803_v50  ;;  %v490_v52 = vld [vmem:[#allocation3 + $0x58] sm:$0xff] }
 0x20b   :  { %v438_v55 = vpop.f32.mrb[18].mxu1  ;;  %1082 = vmatpush1.bf16.msra.mxu0 %v4406_v49  ;;  %1101 = vmatprep.mubr.bf16.mxu0 %v5544_v41  ;;  %v4412_v49 = vcombine.low %v536_v39, %v540_v40  ;;  %v4360_v54 = vcombine.low %v482_v45, %v486_v48  ;;  %v4992_v36 = vld [vmem:[#allocation6 + $0xa8] ss:$16 sps:$4 sm:$0xff]   ;;  %v5003_v40 = vld [vmem:[#allocation6 + $0xe4] ss:$16 sps:$4 sm:$0xff]  }
 0x20c   :  { %v439_v57 = vadd.f32 %v5781_v47, %v438_v55  ;;  %v4850_v59 = vpop.f32.mrb[19].mxu1  ;;  %1083 = vmatprep.subr.bf16.mxu0 %v4415_v51  ;;  %v466_v62 = vmax.f32 %v436_v53, 0.0  ;;  %v4361_v51 = vcombine.high %v482_v45, %v486_v48  ;;  %v494_v53 = vld [vmem:[#allocation3 + $0x78] sm:$0xff]  ;;  %v5009_v48 = vld [vmem:[#allocation6 + $0x104] ss:$16 sps:$4 sm:$0xff]  }
 0x20d   :  { %v4369_v55 = vcombine.high %v490_v52, %v494_v53  ;;  %v4368_v59 = vcombine.low %v490_v52, %v494_v53  ;;  %v4998_v39 = vld [vmem:[#allocation6 + $0xc8] ss:$16 sps:$4 sm:$0xff]   ;;  %v5015_v53 = vld [vmem:[#allocation6 + $0x124] ss:$16 sps:$4 sm:$0xff]  }
 0x20e   :  { %v467_v63 = vmax.f32 %v439_v57, 0.0  ;;  %v502_v57 = vld [vmem:[#allocation3 + $0xb8] sm:$0xff] }
 0x20f   :  { %1084 = vmatpush1.bf16.msra.mxu0 %v4414_v56  ;;  %v498_v56 = vld [vmem:[#allocation3 + $0x98] sm:$0xff] }
 0x210   :  { %v5809_v1 = vpack.c.bf16 %v467_v63, %v466_v62  ;;  %v4377_v60 = vcombine.high %v498_v56, %v502_v57  ;;  %v510_v62 = vld [vmem:[#allocation3 + $0xf8] sm:$0xff]  ;;  %v4376_v63 = vcombine.low %v498_v56, %v502_v57  ;;  %v5021_v57 = vld [vmem:[#allocation6 + $0x144] ss:$16 sps:$4 sm:$0xff]  }
 0x211   :  { %v443_v3 = vpop.f32.mrb[20].mxu1  ;;  %v4384_v5 = vcombine.low %v506_v61, %v510_v62  ;;  %v5004_v45 = vld [vmem:[#allocation6 + $0xe8] ss:$16 sps:$4 sm:$0xff]  }
 0x212   :  { %v444_v6 = vadd.f32 %v5781_v47, %v443_v3  ;;  %v4853_v7 = vpop.f32.mrb[21].mxu1  ;;  %936 = vmatmul.mubr.bf16.vlgmr.msra.gmra.mrb[28].mxu1 %v5809_v1  ;;  %1102 = vmatmul.mubr.bf16.vlgmr.msra.gmra.mrb[32].mxu0 %v5785_v58  ;;  %v514_v3 = vld [vmem:[#allocation3 + $0x118] sm:$0xff] }
 0x213   :  { %967 = vmatpush1.bf16.msra.mxu1 %v4356_v46  ;;  %v446_v8 = vpop.f32.mrb[22].mxu1  ;;  %945 = vmatprep.mubr.bf16.mxu1 %v5544_v41  ;;  %v512_v46 = vld [vmem:[#allocation3 + $0x108] sm:$0xff]  ;;  %v522_v7 = vld [vmem:[#allocation3 + $0x158] sm:$0xff] }
 0x214   :  { %v468_v10 = vmax.f32 %v444_v6, 0.0  ;;  %v447_v11 = vadd.f32 %v5781_v47, %v446_v8  ;;  %968 = vmatprep.subr.bf16.mxu1 %v4365_v2  ;;  %v4854_v13 = vpop.f32.mrb[23].mxu1  ;;  %1111 = vmatprep.mubr.bf16.mxu0 %v5544_v41  ;;  %v4389_v28 = vcombine.high %v512_v46, %v516_v20  ;;  %v4388_v33 = vcombine.low %v512_v46, %v516_v20  ;;  %v526_v8 = vld [vmem:[#allocation3 + $0x178] sm:$0xff]  ;;  %v4959_v46 = vld [vmem:[#allocation6] ss:$16 sps:$4 sm:$0xff]  }
 0x215   :  { %v4385_v2 = vcombine.high %v506_v61, %v510_v62  ;;  %v4393_v6 = vcombine.high %v514_v3, %v518_v4  ;;  %v534_v13 = vld [vmem:[#allocation3 + $0x1b8] sm:$0xff] }
 0x216   :  { %v469_v17 = vmax.f32 %v447_v11, 0.0  ;;  %v530_v11 = vld [vmem:[#allocation3 + $0x198] sm:$0xff] }
 0x217   :  { %969 = vmatpush1.bf16.msra.mxu1 %v4364_v9  ;;  %v4392_v9 = vcombine.low %v514_v3, %v518_v4  ;;  %v4409_v15 = vcombine.high %v530_v11, %v534_v13  ;;  %v4970_v20 = vld [vmem:[#allocation6 + $0x2c] ss:$16 sps:$4 sm:$0xff]   ;;  %v5010_v52 = vld [vmem:[#allocation6 + $0x108] ss:$16 sps:$4 sm:$0xff]   ;;  %v5027_v3 = vld [vmem:[#allocation6 + $0x164] ss:$16 sps:$4 sm:$0xff]  }
 0x218   :  { %v5820_v19 = vpack.c.bf16 %v469_v17, %v468_v10  ;;  %970 = vmatprep.subr.bf16.mxu1 %v4373_v14  ;;  %v4401_v10 = vcombine.high %v522_v7, %v526_v8  ;;  %v4400_v14 = vcombine.low %v522_v7, %v526_v8  ;;  %v542_v17 = vld [vmem:[#allocation3 + $0x1f8] sm:$0xff]  ;;  %v5025_v7 = vld [vmem:[#allocation6 + $0x160] ss:$16 sps:$4 sm:$0xff]  }
 0x219   :  { %v451_v44 = vpop.f32.mrb[24].mxu1  ;;  %v5016_v56 = vld [vmem:[#allocation6 + $0x128] ss:$16 sps:$4 sm:$0xff]   ;;  %v5030_v4 = vld [vmem:[#allocation6 + $0x16c] ss:$16 sps:$4 sm:$0xff]  }
 0x21a   :  { %v452_v21 = vadd.f32 %v5781_v47, %v451_v44  ;;  %v4857_v22 = vpop.f32.mrb[25].mxu1  ;;  %946 = vmatmul.mubr.bf16.gmra.mrb[32].mxu1 %v5820_v19  ;;  %1112 = vmatmul.mubr.bf16.gmra.mrb[36].mxu0 %v5791_v12  ;;  %v4416_v44 = vcombine.low %v538_v16, %v542_v17  ;;  %v5022_v61 = vld [vmem:[#allocation6 + $0x148] ss:$16 sps:$4 sm:$0xff]  }
 0x21b   :  { %971 = vmatpush1.bf16.msra.mxu1 %v4372_v18  ;;  %v454_v23 = vpop.f32.mrb[26].mxu1  ;;  %955 = vmatprep.mubr.bf16.mxu1 %v5544_v41  ;;  %v4408_v18 = vcombine.low %v530_v11, %v534_v13  ;;  %v4971_v22 = vld [vmem:[#allocation6 + $0x40] ss:$16 sps:$4 sm:$0xff]   ;;  %v5028_v8 = vld [vmem:[#allocation6 + $0x168] ss:$16 sps:$4 sm:$0xff]  }
 0x21c   :  { %v470_v25 = vmax.f32 %v452_v21, 0.0  ;;  %v455_v26 = vadd.f32 %v5781_v47, %v454_v23  ;;  %972 = vmatprep.subr.bf16.mxu1 %v4381_v43  ;;  %v4858_v27 = vpop.f32.mrb[27].mxu1  ;;  %1121 = vmatprep.mubr.bf16.mxu0 %v5544_v41  ;;  %v4396_v47 = vcombine.low %v520_v30, %v524_v31  ;;  %v4417_v43 = vcombine.high %v538_v16, %v542_v17  ;;  %v4965_v21 = vld [vmem:[#allocation6 + $0x20] ss:$16 sps:$4 sm:$0xff]   ;;  %v4974_v23 = vld [vmem:[#allocation6 + $0x48] ss:$16 sps:$4 sm:$0xff]  }
 0x21d   :  { %v4980_v27 = vld [vmem:[#allocation6 + $0x68] ss:$16 sps:$4 sm:$0xff]   ;;  %v4988_v30 = vld [vmem:[#allocation6 + $0x8c] ss:$16 sps:$4 sm:$0xff]   ;;  %v4983_v31 = vld [vmem:[#allocation6 + $0x80] ss:$16 sps:$4 sm:$0xff]  }
 0x21e   :  { %v471_v32 = vmax.f32 %v455_v26, 0.0  ;;  %v4977_v26 = vld [vmem:[#allocation6 + $0x60] ss:$16 sps:$4 sm:$0xff]   ;;  %v5036_v11 = vld [vmem:[#allocation6 + $0x18c] ss:$16 sps:$4 sm:$0xff]  }
 0x21f   :  { %973 = vmatpush1.bf16.msra.mxu1 %v4380_v24  ;;  %v4979_v24 = vld [vmem:[#allocation6 + $0x64] ss:$16 sps:$4 sm:$0xff]   ;;  %v5031_v13 = vld [vmem:[#allocation6 + $0x180] ss:$16 sps:$4 sm:$0xff]  }
 0x220   :  { %v5828_v34 = vpack.c.bf16 %v471_v32, %v470_v25  ;;  %974 = vmatprep.subr.bf16.mxu1 %v4389_v28  ;;  %v4982_v25 = vld [vmem:[#allocation6 + $0x6c] ss:$16 sps:$4 sm:$0xff]   ;;  %v4985_v28 = vld [vmem:[#allocation6 + $0x84] ss:$16 sps:$4 sm:$0xff]   ;;  %v4986_v32 = vld [vmem:[#allocation6 + $0x88] ss:$16 sps:$4 sm:$0xff]  }
 0x222   :  { %956 = vmatmul.mubr.bf16.gmra.mrb[36].mxu1 %v5828_v34  ;;  %1122 = vmatmul.mubr.bf16.gmra.mrb[40].mxu0 %v5797_v29 }
 0x223   :  { %975 = vmatpush1.bf16.msra.mxu1 %v4388_v33  ;;  %1131 = vmatprep.mubr.bf16.mxu0 %v5544_v41  ;;  %v4991_v33 = vld [vmem:[#allocation6 + $0xa4] ss:$16 sps:$4 sm:$0xff]  }
 0x224   :  { %976 = vmatprep.subr.bf16.mxu1 %v4397_v35  ;;  %998 = vmatprep.mubr.bf16.mxu1 %v5544_v41  ;;  %v4989_v35 = vld [vmem:[#allocation6 + $0xa0] ss:$16 sps:$4 sm:$0xff]  }
 0x227   :  { %977 = vmatpush1.bf16.msra.mxu1 %v4396_v47  ;;  %v5000_v47 = vld [vmem:[#allocation6 + $0xcc] ss:$16 sps:$4 sm:$0xff]  }
 0x228   :  { %978 = vmatprep.subr.bf16.mxu1 %v4405_v38  ;;  %v4995_v38 = vld [vmem:[#allocation6 + $0xc0] ss:$16 sps:$4 sm:$0xff]  }
 0x22a   :  { %1132 = vmatmul.mubr.bf16.gmra.mrb[44].mxu0 %v5803_v50 }
 0x22b   :  { %979 = vmatpush1.bf16.msra.mxu1 %v4404_v0  ;;  %1141 = vmatprep.mubr.bf16.mxu0 %v5544_v41  ;;  %v5006_v0 = vld [vmem:[#allocation6 + $0xec] ss:$16 sps:$4 sm:$0xff]  }
 0x22c   :  { %980 = vmatprep.subr.bf16.mxu1 %v4413_v42  ;;  %v5001_v42 = vld [vmem:[#allocation6 + $0xe0] ss:$16 sps:$4 sm:$0xff]  }
 0x22f   :  { %981 = vmatpush1.bf16.msra.mxu1 %v4412_v49  ;;  %v5012_v49 = vld [vmem:[#allocation6 + $0x10c] ss:$16 sps:$4 sm:$0xff]  }
 0x230   :  { %1172 = vmatprep.subr.bf16.mxu1 %v4361_v51  ;;  %v5007_v51 = vld [vmem:[#allocation6 + $0x100] ss:$16 sps:$4 sm:$0xff]  }
 0x232   :  { %999 = vmatmul.mubr.bf16.vlgmr.msra.gmra.mrb[40].mxu1 %v5785_v58  ;;  %1142 = vmatmul.mubr.bf16.gmra.mrb[48].mxu0 %v5809_v1 }
 0x233   :  { %1008 = vmatprep.mubr.bf16.mxu1 %v5544_v41  ;;  %1151 = vmatprep.mubr.bf16.mxu0 %v5544_v41 }
 0x234   :  { %1173 = vmatpush1.bf16.msra.mxu1 %v4360_v54  ;;  %v5018_v54 = vld [vmem:[#allocation6 + $0x12c] ss:$16 sps:$4 sm:$0xff]  }
 0x235   :  { %1174 = vmatprep.subr.bf16.mxu1 %v4369_v55  ;;  %v5013_v55 = vld [vmem:[#allocation6 + $0x120] ss:$16 sps:$4 sm:$0xff]  }
 0x238   :  { %1175 = vmatpush1.bf16.msra.mxu1 %v4368_v59  ;;  %v5024_v59 = vld [vmem:[#allocation6 + $0x14c] ss:$16 sps:$4 sm:$0xff]  }
 0x239   :  { %1176 = vmatprep.subr.bf16.mxu1 %v4377_v60  ;;  %v5019_v60 = vld [vmem:[#allocation6 + $0x140] ss:$16 sps:$4 sm:$0xff]  }
 0x23a   :  { %1009 = vmatmul.mubr.bf16.gmra.mrb[44].mxu1 %v5791_v12  ;;  %1152 = vmatmul.mubr.bf16.gmra.mrb[52].mxu0 %v5820_v19 }
 0x23b   :  { %1018 = vmatprep.mubr.bf16.mxu1 %v5544_v41  ;;  %1161 = vmatprep.mubr.bf16.mxu0 %v5544_v41 }
 0x23c   :  { %1177 = vmatpush1.bf16.msra.mxu1 %v4376_v63 }
 0x23d   :  { %1178 = vmatprep.subr.bf16.mxu1 %v4385_v2 }
 0x240   :  { %1179 = vmatpush1.bf16.msra.mxu1 %v4384_v5 }
 0x241   :  { %1180 = vmatprep.subr.bf16.mxu1 %v4393_v6 }
 0x242   :  { %1019 = vmatmul.mubr.bf16.gmra.mrb[48].mxu1 %v5797_v29  ;;  %1162 = vmatmul.mubr.bf16.gmra.mrb[56].mxu0 %v5828_v34 }
 0x243   :  { %1028 = vmatprep.mubr.bf16.mxu1 %v5544_v41 }
 0x244   :  { %1181 = vmatpush1.bf16.msra.mxu1 %v4392_v9 }
 0x245   :  { %1182 = vmatprep.subr.bf16.mxu1 %v4401_v10  ;;  %v5033_v10 = vld [vmem:[#allocation6 + $0x184] ss:$16 sps:$4 sm:$0xff]  }
 0x248   :  { %1183 = vmatpush1.bf16.msra.mxu1 %v4400_v14  ;;  %v5034_v14 = vld [vmem:[#allocation6 + $0x188] ss:$16 sps:$4 sm:$0xff]  }
 0x249   :  { %1184 = vmatprep.subr.bf16.mxu1 %v4409_v15 }
 0x24a   :  { %1029 = vmatmul.mubr.bf16.gmra.mrb[52].mxu1 %v5803_v50 }
 0x24b   :  { %1038 = vmatprep.mubr.bf16.mxu1 %v5544_v41 }
 0x24c   :  { %1185 = vmatpush1.bf16.msra.mxu1 %v4408_v18 }
 0x24d   :  { %1186 = vmatprep.subr.bf16.mxu1 %v4417_v43 }
 0x250   :  { %1187 = vmatpush1.bf16.msra.mxu1 %v4416_v44  ;;  %v5039_v44 = vld [vmem:[#allocation6 + $0x1a4] ss:$16 sps:$4 sm:$0xff]  }
 0x252   :  { %1039 = vmatmul.mubr.bf16.gmra.mrb[56].mxu1 %v5809_v1 }
 0x253   :  { %1048 = vmatprep.mubr.bf16.mxu1 %v5544_v41 }
 0x25a   :  { %1049 = vmatmul.mubr.bf16.gmra.mrb[60].mxu1 %v5820_v19 }
 0x25b   :  { %1058 = vmatprep.mubr.bf16.mxu1 %v5544_v41 }
 0x262   :  { %1059 = vmatmul.mubr.bf16.gmra.mrb[64].mxu1 %v5828_v34 }
 0x263   :  { %1204 = vmatprep.mubr.bf16.mxu1 %v5544_v41 }
 0x26a   :  { %1205 = vmatmul.mubr.bf16.vlgmr.msra.gmra.mrb[68].mxu1 %v5785_v58  ;;  %v4961_v58 = vld [vmem:[#allocation6 + $0x4] ss:$16 sps:$4 sm:$0xff]  }
 0x26b   :  { %1214 = vmatprep.mubr.bf16.mxu1 %v5544_v41  ;;  %3384 = vmatprep.subr.bf16.mxu0 %v4961_v58  ;;  %v5042_v58 = vld [vmem:[#allocation6 + $0x1ac] ss:$16 sps:$4 sm:$0xff]  }
 0x26c   :  { %3385 = vmatpush1.bf16.msra.mxu0 %v4959_v46 }
 0x272   :  { %1215 = vmatmul.mubr.bf16.gmra.mrb[72].mxu1 %v5791_v12  ;;  %v4964_v12 = vld [vmem:[#allocation6 + $0xc] ss:$16 sps:$4 sm:$0xff]  }
 0x273   :  { %1224 = vmatprep.mubr.bf16.mxu1 %v5544_v41  ;;  %3548 = vmatprep.subr.bf16.mxu1 %v4964_v12 }
 0x27a   :  { %1225 = vmatmul.mubr.bf16.gmra.mrb[76].mxu1 %v5797_v29  ;;  %v4962_v29 = vld [vmem:[#allocation6 + $0x8] ss:$16 sps:$4 sm:$0xff]  }
 0x27b   :  { %1234 = vmatprep.mubr.bf16.mxu1 %v5544_v41  ;;  %3549 = vmatpush1.bf16.msra.mxu1 %v4962_v29  ;;  %v5037_v29 = vld [vmem:[#allocation6 + $0x1a0] ss:$16 sps:$4 sm:$0xff]  }
 0x27c   :  { %3550 = vmatprep.subr.bf16.mxu1 %v4970_v20 }
 0x282   :  { %1235 = vmatmul.mubr.bf16.gmra.mrb[80].mxu1 %v5803_v50  ;;  %v4967_v50 = vld [vmem:[#allocation6 + $0x24] ss:$16 sps:$4 sm:$0xff]  }
 0x283   :  { %1244 = vmatprep.mubr.bf16.mxu1 %v5544_v41  ;;  %3386 = vmatprep.subr.bf16.mxu0 %v4967_v50  ;;  %v5040_v50 = vld [vmem:[#allocation6 + $0x1a8] ss:$16 sps:$4 sm:$0xff]  }
 0x284   :  { %3387 = vmatpush1.bf16.msra.mxu0 %v4965_v21  ;;  %v5045_v21 = vld [vmem:[#allocation6 + $0x1c4] ss:$16 sps:$4 sm:$0xff]  }
 0x28a   :  { %1245 = vmatmul.mubr.bf16.gmra.mrb[84].mxu1 %v5809_v1  ;;  %v4968_v1 = vld [vmem:[#allocation6 + $0x28] ss:$16 sps:$4 sm:$0xff]  }
 0x28b   :  { %1254 = vmatprep.mubr.bf16.mxu1 %v5544_v41  ;;  %3551 = vmatpush1.bf16.msra.mxu1 %v4968_v1  ;;  %v5048_v1 = vld [vmem:[#allocation6 + $0x1cc] ss:$16 sps:$4 sm:$0xff]  }
 0x292   :  { %1255 = vmatmul.mubr.bf16.gmra.mrb[88].mxu1 %v5820_v19  ;;  %v4973_v19 = vld [vmem:[#allocation6 + $0x44] ss:$16 sps:$4 sm:$0xff]  }
 0x293   :  { %1264 = vmatprep.mubr.bf16.mxu1 %v5544_v41  ;;  %v4976_v41 = vld [vmem:[#allocation6 + $0x4c] ss:$16 sps:$4 sm:$0xff]   ;;  %3388 = vmatprep.subr.bf16.mxu0 %v4973_v19  ;;  %v5043_v19 = vld [vmem:[#allocation6 + $0x1c0] ss:$16 sps:$4 sm:$0xff]  }
 0x294   :  { %3552 = vmatprep.subr.bf16.mxu1 %v4976_v41  ;;  %3389 = vmatpush1.bf16.msra.mxu0 %v4971_v22  ;;  %v5046_v41 = vld [vmem:[#allocation6 + $0x1c8] ss:$16 sps:$4 sm:$0xff]  }
 0x295   :  { %3553 = vmatpush1.bf16.msra.mxu1 %v4974_v23  ;;  %3390 = vmatprep.subr.bf16.mxu0 %v4979_v24 }
 0x296   :  { %3554 = vmatprep.subr.bf16.mxu1 %v4982_v25 }
 0x298   :  { %3391 = vmatpush1.bf16.msra.mxu0 %v4977_v26 }
 0x299   :  { %3555 = vmatpush1.bf16.msra.mxu1 %v4980_v27  ;;  %3392 = vmatprep.subr.bf16.mxu0 %v4985_v28  ;;  %v5051_v27 = vld [vmem:[#allocation6 + $0x1e4] ss:$16 sps:$4 sm:$0xff]   ;;  %v5054_v28 = vld [vmem:[#allocation6 + $0x1ec] ss:$16 sps:$4 sm:$0xff]  }
 0x29a   :  { %1265 = vmatmul.mubr.bf16.gmra.mrb[92].mxu1 %v5828_v34  ;;  %3556 = vmatprep.subr.bf16.mxu1 %v4988_v30  ;;  %v4994_v34 = vld [vmem:[#allocation6 + $0xac] ss:$16 sps:$4 sm:$0xff]  }
 0x29c   :  { %3393 = vmatpush1.bf16.msra.mxu0 %v4983_v31 }
 0x29d   :  { %3557 = vmatpush1.bf16.msra.mxu1 %v4986_v32  ;;  %3394 = vmatprep.subr.bf16.mxu0 %v4991_v33  ;;  %v5049_v32 = vld [vmem:[#allocation6 + $0x1e0] ss:$16 sps:$4 sm:$0xff]   ;;  %v5052_v33 = vld [vmem:[#allocation6 + $0x1e8] ss:$16 sps:$4 sm:$0xff]  }
 0x29e   :  { %3558 = vmatprep.subr.bf16.mxu1 %v4994_v34 }
 0x2a0   :  { %3395 = vmatpush1.bf16.msra.mxu0 %v4989_v35  ;;  %v5057_v35 = vld [vmem:[#allocation6 + $0x204] ss:$16 sps:$4 sm:$0xff]  }
 0x2a1   :  { %3559 = vmatpush1.bf16.msra.mxu1 %v4992_v36  ;;  %3396 = vmatprep.subr.bf16.mxu0 %v4997_v37  ;;  %v5060_v36 = vld [vmem:[#allocation6 + $0x20c] ss:$16 sps:$4 sm:$0xff]  }
 0x2a2   :  { %3560 = vmatprep.subr.bf16.mxu1 %v5000_v47 }
 0x2a4   :  { %3397 = vmatpush1.bf16.msra.mxu0 %v4995_v38 }
 0x2a5   :  { %3561 = vmatpush1.bf16.msra.mxu1 %v4998_v39  ;;  %3398 = vmatprep.subr.bf16.mxu0 %v5003_v40 }
 0x2a6   :  { %3562 = vmatprep.subr.bf16.mxu1 %v5006_v0 }
 0x2a8   :  { %3399 = vmatpush1.bf16.msra.mxu0 %v5001_v42 }
 0x2a9   :  { %3563 = vmatpush1.bf16.msra.mxu1 %v5004_v45  ;;  %3400 = vmatprep.subr.bf16.mxu0 %v5009_v48 }
 0x2aa   :  { %3564 = vmatprep.subr.bf16.mxu1 %v5012_v49 }
 0x2ac   :  { %3401 = vmatpush1.bf16.msra.mxu0 %v5007_v51 }
 0x2ad   :  { %3565 = vmatpush1.bf16.msra.mxu1 %v5010_v52  ;;  %3402 = vmatprep.subr.bf16.mxu0 %v5015_v53 }
 0x2ae   :  { %3566 = vmatprep.subr.bf16.mxu1 %v5018_v54 }
 0x2b0   :  { %3403 = vmatpush1.bf16.msra.mxu0 %v5013_v55 }
 0x2b1   :  { %3567 = vmatpush1.bf16.msra.mxu1 %v5016_v56  ;;  %3404 = vmatprep.subr.bf16.mxu0 %v5021_v57 }
 0x2b2   :  { %3568 = vmatprep.subr.bf16.mxu1 %v5024_v59 }
 0x2b4   :  { %3405 = vmatpush1.bf16.msra.mxu0 %v5019_v60 }
 0x2b5   :  { %3569 = vmatpush1.bf16.msra.mxu1 %v5022_v61  ;;  %3406 = vmatprep.subr.bf16.mxu0 %v5027_v3 }
 0x2b6   :  { %3570 = vmatprep.subr.bf16.mxu1 %v5030_v4 }
 0x2b8   :  { %3407 = vmatpush1.bf16.msra.mxu0 %v5025_v7 }
 0x2b9   :  { %3571 = vmatpush1.bf16.msra.mxu1 %v5028_v8  ;;  %3408 = vmatprep.subr.bf16.mxu0 %v5033_v10 }
 0x2ba   :  { %3572 = vmatprep.subr.bf16.mxu1 %v5036_v11 }
 0x2bc   :  { %3409 = vmatpush1.bf16.msra.mxu0 %v5031_v13 }
 0x2bd   :  { %3573 = vmatpush1.bf16.msra.mxu1 %v5034_v14  ;;  %3410 = vmatprep.subr.bf16.mxu0 %v5039_v44 }
 0x2be   :  { %3574 = vmatprep.subr.bf16.mxu1 %v5042_v58 }
 0x2c0   :  { %3411 = vmatpush1.bf16.msra.mxu0 %v5037_v29 }
 0x2c1   :  { %3575 = vmatpush1.bf16.msra.mxu1 %v5040_v50  ;;  %3412 = vmatprep.subr.bf16.mxu0 %v5045_v21 }
 0x2c2   :  { %3576 = vmatprep.subr.bf16.mxu1 %v5048_v1 }
 0x2c4   :  { %3413 = vmatpush1.bf16.msra.mxu0 %v5043_v19 }
 0x2c5   :  { %v897_v62 = vpop.f32.mrb[16].mxu0  ;;  %3577 = vmatpush1.bf16.msra.mxu1 %v5046_v41  ;;  %3414 = vmatprep.subr.bf16.mxu0 %v5051_v27 }
 0x2c6   :  { %v899_v63 = vpop.f32.mrb[17].mxu0  ;;  %3578 = vmatprep.subr.bf16.mxu1 %v5054_v28 }
 0x2c7   :  { %v901_v2 = vpop.f32.mrb[18].mxu0 }
 0x2c8   :  { %v1275_v5 = vmax.f32 %v897_v62, %v901_v2  ;;  %v903_v6 = vpop.f32.mrb[19].mxu0  ;;  %3415 = vmatpush1.bf16.msra.mxu0 %v5049_v32 }
 0x2c9   :  { %v1287_v9 = vmax.f32 %v899_v63, %v903_v6  ;;  %3579 = vmatpush1.bf16.msra.mxu1 %v5052_v33  ;;  %3425 = vmatprep.subr.bf16.mxu0 %v5057_v35 }
 0x2ca   :  { %3589 = vmatprep.subr.bf16.mxu1 %v5060_v36 }
 0x2cd   :  { %v907_v15 = vpop.f32.mrb[20].mxu0 }
 0x2ce   :  { %v1276_v16 = vmax.f32 %v1275_v5, %v907_v15  ;;  %v909_v17 = vpop.f32.mrb[21].mxu0 }
 0x2cf   :  { %v1288_v18 = vmax.f32 %v1287_v9, %v909_v17  ;;  %v911_v43 = vpop.f32.mrb[22].mxu0 }
 0x2d0   :  { %v1277_v12 = vmax.f32 %v1276_v16, %v911_v43  ;;  %v913_v46 = vpop.f32.mrb[23].mxu0 }
 0x2d1   :  { %v1289_v20 = vmax.f32 %v1288_v18, %v913_v46 }
 0x2d5   :  { %v917_v22 = vpop.f32.mrb[24].mxu0 }
 0x2d6   :  { %v1278_v23 = vmax.f32 %v1277_v12, %v917_v22  ;;  %v919_v24 = vpop.f32.mrb[25].mxu0 }
 0x2d7   :  { %v1290_v25 = vmax.f32 %v1289_v20, %v919_v24  ;;  %v921_v26 = vpop.f32.mrb[26].mxu0 }
 0x2d8   :  { %v1279_v30 = vmax.f32 %v1278_v23, %v921_v26  ;;  %v923_v31 = vpop.f32.mrb[27].mxu0 }
 0x2d9   :  { %v1291_v34 = vmax.f32 %v1290_v25, %v923_v31 }
 0x2dd   :  { %v927_v37 = vpop.f32.mrb[28].mxu0 }
 0x2de   :  { %v1280_v47 = vmax.f32 %v1279_v30, %v927_v37  ;;  %v929_v38 = vpop.f32.mrb[29].mxu0 }
 0x2df   :  { %v1292_v39 = vmax.f32 %v1291_v34, %v929_v38  ;;  %v931_v40 = vpop.f32.mrb[30].mxu0 }
 0x2e0   :  { %v1281_v0 = vrot.slane %v1280_v47, 4  ;;  %v933_v42 = vpop.f32.mrb[31].mxu0 }
 0x2e1   :  { %v1293_v45 = vrot.slane %v1292_v39, 4 }
 0x2e2   :  { %v1282_v48 = vmax.f32 %v1280_v47, %v1281_v0 }
 0x2e3   :  { %v1294_v49 = vmax.f32 %v1292_v39, %v1293_v45 }
 0x2e4   :  { %v1283_v51 = vrot.slane %v1282_v48, 2 }
 0x2e5   :  { %v1295_v52 = vrot.slane %v1294_v49, 2  ;;  %v937_v53 = vpop.f32.mrb[28].mxu1  ;;  %v1103_v54 = vpop.f32.mrb[32].mxu0 }
 0x2e6   :  { %v1284_v55 = vmax.f32 %v1282_v48, %v1283_v51  ;;  %v1371_v56 = vmax.f32 %v931_v40, %v937_v53  ;;  %v939_v57 = vpop.f32.mrb[29].mxu1  ;;  %v1105_v59 = vpop.f32.mrb[33].mxu0 }
 0x2e7   :  { %v1296_v60 = vmax.f32 %v1294_v49, %v1295_v52  ;;  %v1383_v61 = vmax.f32 %v933_v42, %v939_v57  ;;  %v941_v62 = vpop.f32.mrb[30].mxu1  ;;  %v1107_v63 = vpop.f32.mrb[34].mxu0 }
 0x2e8   :  { %v1285_v2 = vrot.slane %v1284_v55, 1  ;;  %v1372_v3 = vmax.f32 %v1371_v56, %v941_v62  ;;  %v1323_v4 = vmax.f32 %v1103_v54, %v1107_v63  ;;  %v943_v5 = vpop.f32.mrb[31].mxu1  ;;  %v1109_v6 = vpop.f32.mrb[35].mxu0 }
 0x2e9   :  { %v1297_v7 = vrot.slane %v1296_v60, 1  ;;  %v1384_v8 = vmax.f32 %v1383_v61, %v943_v5  ;;  %v1335_v9 = vmax.f32 %v1105_v59, %v1109_v6 }
 0x2ea   :  { %v5868_v10 = vmax.f32 %v1284_v55, %v1285_v2 }
 0x2eb   :  { %v5870_v11 = vmax.f32 %v1296_v60, %v1297_v7 }
 0x2ed   :  { %v1487_v13 = vcombine.low %v5868_v10, %v5870_v11  ;;  %v947_v14 = vpop.f32.mrb[32].mxu1  ;;  %v1113_v15 = vpop.f32.mrb[36].mxu0 }
 0x2ee   :  { %v1373_v16 = vmax.f32 %v1372_v3, %v947_v14  ;;  %v1324_v17 = vmax.f32 %v1323_v4, %v1113_v15  ;;  %v949_v18 = vpop.f32.mrb[33].mxu1  ;;  %v1115_v43 = vpop.f32.mrb[37].mxu0 }
 0x2ef   :  { %v1385_v44 = vmax.f32 %v1384_v8, %v949_v18  ;;  %v1336_v58 = vmax.f32 %v1335_v9, %v1115_v43  ;;  %v951_v12 = vpop.f32.mrb[34].mxu1  ;;  %v1117_v46 = vpop.f32.mrb[38].mxu0 }
 0x2f0   :  { %v1374_v29 = vmax.f32 %v1373_v16, %v951_v12  ;;  %v1325_v50 = vmax.f32 %v1324_v17, %v1117_v46  ;;  %v953_v20 = vpop.f32.mrb[35].mxu1  ;;  %v1119_v21 = vpop.f32.mrb[39].mxu0 }
 0x2f1   :  { %v1386_v1 = vmax.f32 %v1385_v44, %v953_v20  ;;  %v1337_v19 = vmax.f32 %v1336_v58, %v1119_v21 }
 0x2f5   :  { %v957_v41 = vpop.f32.mrb[36].mxu1  ;;  %v1123_v22 = vpop.f32.mrb[40].mxu0 }
 0x2f6   :  { %v1375_v23 = vmax.f32 %v1374_v29, %v957_v41  ;;  %v1326_v24 = vmax.f32 %v1325_v50, %v1123_v22  ;;  %v959_v25 = vpop.f32.mrb[37].mxu1  ;;  %v1125_v26 = vpop.f32.mrb[41].mxu0 }
 0x2f7   :  { %v1387_v27 = vmax.f32 %v1386_v1, %v959_v25  ;;  %v1338_v28 = vmax.f32 %v1337_v19, %v1125_v26  ;;  %v961_v30 = vpop.f32.mrb[38].mxu1  ;;  %v1127_v31 = vpop.f32.mrb[42].mxu0 }
 0x2f8   :  { %v1376_v32 = vmax.f32 %v1375_v23, %v961_v30  ;;  %v1327_v33 = vmax.f32 %v1326_v24, %v1127_v31  ;;  %v963_v34 = vpop.f32.mrb[39].mxu1  ;;  %v1129_v35 = vpop.f32.mrb[43].mxu0 }
 0x2f9   :  { %v1388_v36 = vmax.f32 %v1387_v27, %v963_v34  ;;  %v1339_v37 = vmax.f32 %v1338_v28, %v1129_v35 }
 0x2fa   :  { %v1377_v47 = vrot.slane %v1376_v32, 4 }
 0x2fb   :  { %v1389_v38 = vrot.slane %v1388_v36, 4 }
 0x2fc   :  { %v1378_v39 = vmax.f32 %v1376_v32, %v1377_v47 }
 0x2fd   :  { %v1390_v40 = vmax.f32 %v1388_v36, %v1389_v38  ;;  %v1133_v0 = vpop.f32.mrb[44].mxu0 }
 0x2fe   :  { %v1379_v42 = vrot.slane %v1378_v39, 2  ;;  %v1328_v45 = vmax.f32 %v1327_v33, %v1133_v0  ;;  %v1135_v48 = vpop.f32.mrb[45].mxu0 }
 0x2ff   :  { %v1391_v49 = vrot.slane %v1390_v40, 2  ;;  %v1340_v51 = vmax.f32 %v1339_v37, %v1135_v48  ;;  %v1137_v52 = vpop.f32.mrb[46].mxu0 }
 0x300   :  { %v1380_v53 = vmax.f32 %v1378_v39, %v1379_v42  ;;  %v1329_v54 = vrot.slane %v1328_v45, 4  ;;  %v1139_v55 = vpop.f32.mrb[47].mxu0 }
 0x301   :  { %v1392_v56 = vmax.f32 %v1390_v40, %v1391_v49  ;;  %v1341_v57 = vrot.slane %v1340_v51, 4 }
 0x302   :  { %v1381_v59 = vrot.slane %v1380_v53, 1  ;;  %v1330_v60 = vmax.f32 %v1328_v45, %v1329_v54 }
 0x303   :  { %v1393_v61 = vrot.slane %v1392_v56, 1  ;;  %v1342_v62 = vmax.f32 %v1340_v51, %v1341_v57 }
 0x304   :  { %v5874_v63 = vmax.f32 %v1380_v53, %v1381_v59  ;;  %v1331_v2 = vrot.slane %v1330_v60, 2 }
 0x305   :  { %v5876_v3 = vmax.f32 %v1392_v56, %v1393_v61  ;;  %v1343_v4 = vrot.slane %v1342_v62, 2  ;;  %v1000_v5 = vpop.f32.mrb[40].mxu1  ;;  %v1143_v6 = vpop.f32.mrb[48].mxu0 }
 0x306   :  { %v1332_v7 = vmax.f32 %v1330_v60, %v1331_v2  ;;  %v1002_v8 = vpop.f32.mrb[41].mxu1  ;;  %v1419_v9 = vmax.f32 %v1137_v52, %v1143_v6  ;;  %v1145_v14 = vpop.f32.mrb[49].mxu0 }
 0x307   :  { %v1521_v15 = vcombine.low %v5874_v63, %v5876_v3  ;;  %v1344_v16 = vmax.f32 %v1342_v62, %v1343_v4  ;;  %v1004_v17 = vpop.f32.mrb[42].mxu1  ;;  %v1431_v18 = vmax.f32 %v1139_v55, %v1145_v14  ;;  %v1147_v43 = vpop.f32.mrb[50].mxu0 }
 0x308   :  { %v1333_v44 = vrot.slane %v1332_v7, 1  ;;  %v1299_v58 = vmax.f32 %v1000_v5, %v1004_v17  ;;  %v1006_v12 = vpop.f32.mrb[43].mxu1  ;;  %v1420_v46 = vmax.f32 %v1419_v9, %v1147_v43  ;;  %v1149_v29 = vpop.f32.mrb[51].mxu0 }
 0x309   :  { %v1345_v50 = vrot.slane %v1344_v16, 1  ;;  %v1311_v20 = vmax.f32 %v1002_v8, %v1006_v12  ;;  %v1432_v21 = vmax.f32 %v1431_v18, %v1149_v29 }
 0x30a   :  { %v5880_v1 = vmax.f32 %v1332_v7, %v1333_v44 }
 0x30b   :  { %v5882_v19 = vmax.f32 %v1344_v16, %v1345_v50  ;;  %v1492_v50 = vlaneseq }
 0x30d   :  { %v1504_v41 = vcombine.low %v5880_v1, %v5882_v19  ;;  %v1010_v22 = vpop.f32.mrb[44].mxu1  ;;  %v1153_v23 = vpop.f32.mrb[52].mxu0 }
 0x30e   :  { %v1300_v24 = vmax.f32 %v1299_v58, %v1010_v22  ;;  %v1012_v25 = vpop.f32.mrb[45].mxu1  ;;  %v1421_v26 = vmax.f32 %v1420_v46, %v1153_v23  ;;  %v1155_v27 = vpop.f32.mrb[53].mxu0  ;;  %v5545_v58 = vmov 1983009808  }
 0x30f   :  { %v1312_v28 = vmax.f32 %v1311_v20, %v1012_v25  ;;  %v1014_v30 = vpop.f32.mrb[46].mxu1  ;;  %v1433_v31 = vmax.f32 %v1432_v21, %v1155_v27  ;;  %v1157_v32 = vpop.f32.mrb[54].mxu0  ;;  %v1490_v12 = vunpack.c.l.s4 %v5545_v58 }
 0x310   :  { %v1301_v33 = vmax.f32 %v1300_v24, %v1014_v30  ;;  %v1016_v34 = vpop.f32.mrb[47].mxu1  ;;  %v1422_v35 = vmax.f32 %v1421_v26, %v1157_v32  ;;  %v1159_v36 = vpop.f32.mrb[55].mxu0  ;;  %v5890_v32 = vshrl.u32 %v1492_v50, 7 }
 0x311   :  { %v1313_v37 = vmax.f32 %v1312_v28, %v1016_v34  ;;  %v1434_v47 = vmax.f32 %v1433_v31, %v1159_v36  ;;  %v1491_v27 = vunpack.c.0.s8 %v1490_v12  ;;  %v5914_v12 = vld [vmem:[%s6145_s6] sm:$0xff] }
 0x312   :  { %v1716_v50 = vsub.s32 3, %v5890_v32 }
 0x315   :  { %v1020_v38 = vpop.f32.mrb[48].mxu1  ;;  %v1163_v39 = vpop.f32.mrb[56].mxu0 }
 0x316   :  { %v1302_v40 = vmax.f32 %v1301_v33, %v1020_v38  ;;  %v1022_v0 = vpop.f32.mrb[49].mxu1  ;;  %v1423_v42 = vmax.f32 %v1422_v35, %v1163_v39  ;;  %v1165_v45 = vpop.f32.mrb[57].mxu0 }
 0x317   :  { %v1314_v48 = vmax.f32 %v1313_v37, %v1022_v0  ;;  %v1024_v49 = vpop.f32.mrb[50].mxu1  ;;  %v1435_v51 = vmax.f32 %v1434_v47, %v1165_v45  ;;  %v1167_v52 = vpop.f32.mrb[58].mxu0 }
 0x318   :  { %v1303_v53 = vmax.f32 %v1302_v40, %v1024_v49  ;;  %v1026_v54 = vpop.f32.mrb[51].mxu1  ;;  %v1424_v55 = vmax.f32 %v1423_v42, %v1167_v52  ;;  %v1169_v56 = vpop.f32.mrb[59].mxu0  ;;  %v5895_v42 = vsub.s32 %v1491_v27, %v5890_v32 }
 0x319   :  { %v1315_v57 = vmax.f32 %v1314_v48, %v1026_v54  ;;  %v1436_v59 = vmax.f32 %v1435_v51, %v1169_v56 }
 0x31a   :  { %v1425_v60 = vrot.slane %v1424_v55, 4 }
 0x31b   :  { %v1437_v61 = vrot.slane %v1436_v59, 4 }
 0x31c   :  { %v1426_v62 = vmax.f32 %v1424_v55, %v1425_v60 }
 0x31d   :  { %v1438_v2 = vmax.f32 %v1436_v59, %v1437_v61  ;;  %v1030_v4 = vpop.f32.mrb[52].mxu1 }
 0x31e   :  { %v1427_v5 = vrot.slane %v1426_v62, 2  ;;  %v1304_v6 = vmax.f32 %v1303_v53, %v1030_v4  ;;  %v1032_v7 = vpop.f32.mrb[53].mxu1  ;;  %v5901_v53 = vrot.slane %v1487_v13, %v5895_v42 }
 0x31f   :  { %v1439_v8 = vrot.slane %v1438_v2, 2  ;;  %v1316_v9 = vmax.f32 %v1315_v57, %v1032_v7  ;;  %v1034_v14 = vpop.f32.mrb[54].mxu1 }
 0x320   :  { %v1428_v16 = vmax.f32 %v1426_v62, %v1427_v5  ;;  %v1305_v17 = vrot.slane %v1304_v6, 4  ;;  %v1036_v18 = vpop.f32.mrb[55].mxu1 }
 0x321   :  { %v1440_v43 = vmax.f32 %v1438_v2, %v1439_v8  ;;  %v1317_v44 = vrot.slane %v1316_v9, 4 }
 0x322   :  { %v1429_v46 = vrot.slane %v1428_v16, 1  ;;  %v1306_v29 = vmax.f32 %v1304_v6, %v1305_v17 }
 0x323   :  { %v1441_v20 = vrot.slane %v1440_v43, 1  ;;  %v1318_v21 = vmax.f32 %v1316_v9, %v1317_v44 }
 0x324   :  { %v5886_v22 = vmax.f32 %v1428_v16, %v1429_v46  ;;  %v1307_v23 = vrot.slane %v1306_v29, 2  ;;  %v5917_v46 = vsub.s32 1, %v5890_v32 }
 0x325   :  { %v5888_v24 = vmax.f32 %v1440_v43, %v1441_v20  ;;  %v1319_v25 = vrot.slane %v1318_v21, 2  ;;  %v1040_v26 = vpop.f32.mrb[56].mxu1  ;;  %v5909_v43 = vsub.s32 0, %v5890_v32 }
 0x326   :  { %v1308_v28 = vmax.f32 %v1306_v29, %v1307_v23  ;;  %v1395_v30 = vmax.f32 %v1034_v14, %v1040_v26  ;;  %v1042_v31 = vpop.f32.mrb[57].mxu1  ;;  %v1712_v29 = vsub.s32 2, %v5890_v32 }
 0x327   :  { %v1538_v33 = vcombine.low %v5886_v22, %v5888_v24  ;;  %v1320_v34 = vmax.f32 %v1318_v21, %v1319_v25  ;;  %v1407_v35 = vmax.f32 %v1036_v18, %v1042_v31  ;;  %v1044_v36 = vpop.f32.mrb[58].mxu1  ;;  %v1709_v31 = vrot.slane %v5914_v12, %v5917_v46  ;;  %v5121_v22 = vld [vmem:[#allocation6 + $0x360] ss:$16 sps:$4 sm:$0xff]   ;;  %v5124_v24 = vld [vmem:[#allocation6 + $0x368] ss:$16 sps:$4 sm:$0xff]  }
 0x328   :  { %v1309_v37 = vrot.slane %v1308_v28, 1  ;;  %v1396_v47 = vmax.f32 %v1395_v30, %v1044_v36  ;;  %v1046_v38 = vpop.f32.mrb[59].mxu1 }
 0x329   :  { %v1321_v39 = vrot.slane %v1320_v34, 1  ;;  %v1408_v40 = vmax.f32 %v1407_v35, %v1046_v38  ;;  %v1717_v35 = vrot.slane %v5914_v12, %v1716_v50 }
 0x32a   :  { %v1310_v0 = vmax.f32 %v1308_v28, %v1309_v37  ;;  %v1705_v28 = vrot.slane %v5914_v12, %v5909_v43 }
 0x32b   :  { %v1322_v45 = vmax.f32 %v1320_v34, %v1321_v39  ;;  %v1713_v34 = vrot.slane %v5914_v12, %v1712_v29 }
 0x32d   :  { %v1488_v48 = vcombine.low %v1310_v0, %v1322_v45  ;;  %v1050_v49 = vpop.f32.mrb[60].mxu1 }
 0x32e   :  { %v1397_v51 = vmax.f32 %v1396_v47, %v1050_v49  ;;  %v1052_v52 = vpop.f32.mrb[61].mxu1  ;;  %v1735_v49 = vcombine.low %v1713_v34, %v1717_v35  ;;  %v5055_v34 = vld [vmem:[#allocation6 + $0x200] ss:$16 sps:$4 sm:$0xff]   ;;  %v5058_v35 = vld [vmem:[#allocation6 + $0x208] ss:$16 sps:$4 sm:$0xff]  }
 0x32f   :  { %v5904_v54 = vrot.slane %v1488_v48, %v5895_v42  ;;  %v1409_v55 = vmax.f32 %v1408_v40, %v1052_v52  ;;  %v1054_v56 = vpop.f32.mrb[62].mxu1  ;;  %v1734_v48 = vcombine.low %v1705_v28, %v1709_v31 }
 0x330   :  { %v1398_v57 = vmax.f32 %v1397_v51, %v1054_v56  ;;  %v1056_v59 = vpop.f32.mrb[63].mxu1 }
 0x331   :  { %v1503_v60 = vcombine.low %v5901_v53, %v5904_v54  ;;  %v1410_v61 = vmax.f32 %v1409_v55, %v1056_v59  ;;  %v1529_v55 = vrot.slane %v1521_v15, %v5895_v42 }
 0x335   :  { %v1060_v62 = vpop.f32.mrb[64].mxu1 }
 0x336   :  { %v1399_v2 = vmax.f32 %v1398_v57, %v1060_v62  ;;  %v1062_v4 = vpop.f32.mrb[65].mxu1  ;;  %v1749_v62 = vrot.slane %v1735_v49, %v5895_v42 }
 0x337   :  { %v1411_v5 = vmax.f32 %v1410_v61, %v1062_v4  ;;  %v1064_v6 = vpop.f32.mrb[66].mxu1  ;;  %v1742_v61 = vrot.slane %v1734_v48, %v5895_v42 }
 0x338   :  { %v1400_v7 = vmax.f32 %v1399_v2, %v1064_v6  ;;  %v1066_v10 = vpop.f32.mrb[67].mxu1 }
 0x339   :  { %v1412_v11 = vmax.f32 %v1411_v5, %v1066_v10  ;;  %v1750_v3 = vcombine.low %v1742_v61, %v1749_v62 }
 0x33a   :  { %v1401_v13 = vrot.slane %v1400_v7, 4 }
 0x33b   :  { %v1413_v8 = vrot.slane %v1412_v11, 4 }
 0x33c   :  { %v1402_v9 = vmax.f32 %v1400_v7, %v1401_v13 }
 0x33d   :  { %v1414_v14 = vmax.f32 %v1412_v11, %v1413_v8  ;;  %v1206_v16 = vpop.f32.mrb[68].mxu1 }
 0x33e   :  { %v1403_v17 = vrot.slane %v1402_v9, 2  ;;  %v1208_v18 = vpop.f32.mrb[69].mxu1 }
 0x33f   :  { %v1415_v44 = vrot.slane %v1414_v14, 2  ;;  %v1210_v58 = vpop.f32.mrb[70].mxu1 }
 0x340   :  { %v1404_v20 = vmax.f32 %v1402_v9, %v1403_v17  ;;  %v1347_v21 = vmax.f32 %v1206_v16, %v1210_v58  ;;  %v1212_v23 = vpop.f32.mrb[71].mxu1 }
 0x341   :  { %v1416_v25 = vmax.f32 %v1414_v14, %v1415_v44  ;;  %v1359_v26 = vmax.f32 %v1208_v18, %v1212_v23 }
 0x342   :  { %v1405_v27 = vrot.slane %v1404_v20, 1 }
 0x343   :  { %v1417_v30 = vrot.slane %v1416_v25, 1 }
 0x344   :  { %v1406_v36 = vmax.f32 %v1404_v20, %v1405_v27 }
 0x345   :  { %v1418_v37 = vmax.f32 %v1416_v25, %v1417_v30  ;;  %v1216_v47 = vpop.f32.mrb[72].mxu1 }
 0x346   :  { %v1348_v38 = vmax.f32 %v1347_v21, %v1216_v47  ;;  %v1218_v39 = vpop.f32.mrb[73].mxu1 }
 0x347   :  { %v1522_v40 = vcombine.low %v1406_v36, %v1418_v37  ;;  %v1360_v0 = vmax.f32 %v1359_v26, %v1218_v39  ;;  %v1220_v45 = vpop.f32.mrb[74].mxu1 }
 0x348   :  { %v1349_v51 = vmax.f32 %v1348_v38, %v1220_v45  ;;  %v1222_v52 = vpop.f32.mrb[75].mxu1  ;;  %v5066_v45 = vld [vmem:[#allocation6 + $0x22c] ss:$16 sps:$4 sm:$0xff]  }
 0x349   :  { %v1536_v56 = vrot.slane %v1522_v40, %v5895_v42  ;;  %v1361_v57 = vmax.f32 %v1360_v0, %v1222_v52  ;;  %v5063_v0 = vld [vmem:[#allocation6 + $0x224] ss:$16 sps:$4 sm:$0xff]  }
 0x34b   :  { %v1537_v59 = vcombine.low %v1529_v55, %v1536_v56 }
 0x34d   :  { %v1559_v2 = vrot.slane %v1537_v59, 7  ;;  %v1226_v4 = vpop.f32.mrb[76].mxu1  ;;  %v5064_v59 = vld [vmem:[#allocation6 + $0x228] ss:$16 sps:$4 sm:$0xff]  }
 0x34e   :  { %v1350_v5 = vmax.f32 %v1349_v51, %v1226_v4  ;;  %v1228_v6 = vpop.f32.mrb[77].mxu1  ;;  %v5069_v4 = vld [vmem:[#allocation6 + $0x244] ss:$16 sps:$4 sm:$0xff]  }
 0x34f   :  { %v1362_v7 = vmax.f32 %v1361_v57, %v1228_v6  ;;  %v1230_v10 = vpop.f32.mrb[78].mxu1  ;;  %v1561_v63 = vsel %vm1560_vm3, %v1559_v2, %v1503_v60  ;;  %v5061_v57 = vld [vmem:[#allocation6 + $0x220] ss:$16 sps:$4 sm:$0xff]  }
 0x350   :  { %v1351_v15 = vmax.f32 %v1350_v5, %v1230_v10  ;;  %v1232_v11 = vpop.f32.mrb[79].mxu1  ;;  %v1563_v13 = vsel %vm1562_vm4, %v1559_v2, %v1561_v63  ;;  %v5072_v5 = vld [vmem:[#allocation6 + $0x24c] ss:$16 sps:$4 sm:$0xff]  }
 0x351   :  { %v1363_v8 = vmax.f32 %v1362_v7, %v1232_v11  ;;  %v1565_v9 = vsel %vm1564_vm5, %v1559_v2, %v1563_v13  ;;  %v5075_v11 = vld [vmem:[#allocation6 + $0x264] ss:$16 sps:$4 sm:$0xff]   ;;  %v5078_v13 = vld [vmem:[#allocation6 + $0x26c] ss:$16 sps:$4 sm:$0xff]  }
 0x352   :  { %v1567_v14 = vsel %vm1566_vm6, %v1559_v2, %v1565_v9 }
 0x353   :  { %v1770_v16 = vadd.f32 %v1750_v3, %v1567_v14  ;;  %v5067_v3 = vld [vmem:[#allocation6 + $0x240] ss:$16 sps:$4 sm:$0xff]  }
 0x355   :  { %v1236_v17 = vpop.f32.mrb[80].mxu1  ;;  %v1772_v18 = vmax.f32 %v1770_v16, 0.0 }
 0x356   :  { %v1352_v44 = vmax.f32 %v1351_v15, %v1236_v17  ;;  %v1238_v58 = vpop.f32.mrb[81].mxu1  ;;  %v5070_v15 = vld [vmem:[#allocation6 + $0x248] ss:$16 sps:$4 sm:$0xff]   ;;  %v5955_v17 = vrot.slane %v1504_v41, %v5895_v42  ;;  %v5079_v41 = vld [vmem:[#allocation6 + $0x280] ss:$16 sps:$4 sm:$0xff]  }
 0x357   :  { %v1364_v20 = vmax.f32 %v1363_v8, %v1238_v58  ;;  %v1240_v53 = vpop.f32.mrb[82].mxu1  ;;  %v1783_v54 = vrot.slane %v1772_v18, %v5895_v42  ;;  %v1776_v60 = vcombine.high %v1772_v18, %v1772_v18 }
 0x358   :  { %v1353_v21 = vrot.slane %v1352_v44, 4  ;;  %v1242_v23 = vpop.f32.mrb[83].mxu1 }
 0x359   :  { %v1365_v25 = vrot.slane %v1364_v20, 4  ;;  %v1791_v26 = vcombine.high %v1783_v54, %v1783_v54  ;;  %v5947_v27 = vrot.slane %v1776_v60, %v5895_v42  ;;  %v1818_v47 = vpack.c.bf16 %v1783_v54, %v1783_v54 }
 0x35a   :  { %v1354_v28 = vmax.f32 %v1352_v44, %v1353_v21  ;;  %v5081_v21 = vld [vmem:[#allocation6 + $0x284] ss:$16 sps:$4 sm:$0xff]  }
 0x35b   :  { %v1366_v30 = vmax.f32 %v1364_v20, %v1365_v25  ;;  %v1819_v31 = vpack.c.bf16 %v1791_v26, %v1791_v26  ;;  %v1792_v36 = vcombine.high %v5947_v27, %v5947_v27  ;;  %v5073_v20 = vld [vmem:[#allocation6 + $0x260] ss:$16 sps:$4 sm:$0xff]   ;;  %v5082_v25 = vld [vmem:[#allocation6 + $0x288] ss:$16 sps:$4 sm:$0xff]   ;;  %v5087_v26 = vld [vmem:[#allocation6 + $0x2a4] ss:$16 sps:$4 sm:$0xff]  }
 0x35c   :  { %v1355_v37 = vrot.slane %v1354_v28, 2 }
 0x35d   :  { %v1367_v38 = vrot.slane %v1366_v30, 2  ;;  %v1246_v39 = vpop.f32.mrb[84].mxu1  ;;  %3416 = vmatprep.mubr.bf16.mxu0 %v1819_v31  ;;  %3580 = vmatprep.mubr.bf16.mxu1 %v1819_v31  ;;  %v1821_v40 = vpack.c.bf16 %v1792_v36, %v1792_v36 }
 0x35e   :  { %v1356_v48 = vmax.f32 %v1354_v28, %v1355_v37  ;;  %v1443_v49 = vmax.f32 %v1240_v53, %v1246_v39  ;;  %v1248_v51 = vpop.f32.mrb[85].mxu1  ;;  %3417 = vmatmul.mubr.bf16.vlgmr.msra.gmra.mrb[60].mxu0 %v1818_v47  ;;  %3581 = vmatmul.mubr.bf16.vlgmr.msra.gmra.mrb[96].mxu1 %v1818_v47  ;;  %v5076_v53 = vld [vmem:[#allocation6 + $0x268] ss:$16 sps:$4 sm:$0xff]   ;;  %v5090_v28 = vld [vmem:[#allocation6 + $0x2ac] ss:$16 sps:$4 sm:$0xff]  }
 0x35f   :  { %v1368_v52 = vmax.f32 %v1366_v30, %v1367_v38  ;;  %v1455_v55 = vmax.f32 %v1242_v23, %v1248_v51  ;;  %3426 = vmatpush1.bf16.msra.mxu0 %v5055_v34  ;;  %3590 = vmatpush1.bf16.msra.mxu1 %v5058_v35  ;;  %v1250_v56 = vpop.f32.mrb[86].mxu1  ;;  %v5084_v23 = vld [vmem:[#allocation6 + $0x28c] ss:$16 sps:$4 sm:$0xff]   ;;  %v5085_v37 = vld [vmem:[#allocation6 + $0x2a0] ss:$16 sps:$4 sm:$0xff]  }
 0x360   :  { %v1357_v61 = vrot.slane %v1356_v48, 1  ;;  %v1444_v62 = vmax.f32 %v1443_v49, %v1250_v56  ;;  %3457 = vmatprep.mubr.bf16.mxu0 %v1821_v40  ;;  %3621 = vmatprep.mubr.bf16.mxu1 %v1821_v40  ;;  %v1252_v2 = vpop.f32.mrb[87].mxu1  ;;  %v5088_v47 = vld [vmem:[#allocation6 + $0x2a8] ss:$16 sps:$4 sm:$0xff]   ;;  %v5093_v40 = vld [vmem:[#allocation6 + $0x2c4] ss:$16 sps:$4 sm:$0xff]  }
 0x361   :  { %v1369_v6 = vrot.slane %v1368_v52, 1  ;;  %v1456_v7 = vmax.f32 %v1455_v55, %v1252_v2  ;;  %3427 = vmatprep.subr.bf16.mxu0 %v5063_v0  ;;  %3591 = vmatprep.subr.bf16.mxu1 %v5066_v45  ;;  %v5096_v0 = vld [vmem:[#allocation6 + $0x2cc] ss:$16 sps:$4 sm:$0xff]   ;;  %v5091_v51 = vld [vmem:[#allocation6 + $0x2c0] ss:$16 sps:$4 sm:$0xff]   ;;  %v1720_v2 = vsub.s32 4, %v5890_v32 }
 0x362   :  { %v1358_v10 = vmax.f32 %v1356_v48, %v1357_v61  ;;  %v5099_v56 = vld [vmem:[#allocation6 + $0x2e4] ss:$16 sps:$4 sm:$0xff]  }
 0x363   :  { %v1370_v63 = vmax.f32 %v1368_v52, %v1369_v6  ;;  %3428 = vmatpush1.bf16.msra.mxu0 %v5061_v57  ;;  %3592 = vmatpush1.bf16.msra.mxu1 %v5064_v59  ;;  %v5094_v52 = vld [vmem:[#allocation6 + $0x2c8] ss:$16 sps:$4 sm:$0xff]   ;;  %v5102_v57 = vld [vmem:[#allocation6 + $0x2ec] ss:$16 sps:$4 sm:$0xff]   ;;  %v1724_v6 = vsub.s32 5, %v5890_v32 }
 0x364   :  { %3429 = vmatprep.subr.bf16.mxu0 %v5069_v4  ;;  %3593 = vmatprep.subr.bf16.mxu1 %v5072_v5  ;;  %v5100_v5 = vld [vmem:[#allocation6 + $0x2e8] ss:$16 sps:$4 sm:$0xff]  }
 0x365   :  { %v1505_v8 = vcombine.low %v1358_v10, %v1370_v63  ;;  %v1256_v9 = vpop.f32.mrb[88].mxu1  ;;  %v1732_v10 = vsub.s32 7, %v5890_v32 }
 0x366   :  { %v1445_v14 = vmax.f32 %v1444_v62, %v1256_v9  ;;  %v1258_v16 = vpop.f32.mrb[89].mxu1  ;;  %v5097_v62 = vld [vmem:[#allocation6 + $0x2e0] ss:$16 sps:$4 sm:$0xff]  }
 0x367   :  { %v5958_v18 = vrot.slane %v1505_v8, %v5895_v42  ;;  %v1457_v44 = vmax.f32 %v1456_v7, %v1258_v16  ;;  %3430 = vmatpush1.bf16.msra.mxu0 %v5067_v3  ;;  %3594 = vmatpush1.bf16.msra.mxu1 %v5070_v15  ;;  %v1260_v58 = vpop.f32.mrb[90].mxu1  ;;  %v1728_v7 = vsub.s32 6, %v5890_v32  ;;  %v5105_v3 = vld [vmem:[#allocation6 + $0x304] ss:$16 sps:$4 sm:$0xff]   ;;  %v5108_v15 = vld [vmem:[#allocation6 + $0x30c] ss:$16 sps:$4 sm:$0xff]   ;;  %v1721_v8 = vrot.slane %v5914_v12, %v1720_v2 }
 0x368   :  { %v1446_v54 = vmax.f32 %v1445_v14, %v1260_v58  ;;  %v1262_v60 = vpop.f32.mrb[91].mxu1  ;;  %3431 = vmatprep.subr.bf16.mxu0 %v5075_v11  ;;  %3595 = vmatprep.subr.bf16.mxu1 %v5078_v13  ;;  %v5103_v14 = vld [vmem:[#allocation6 + $0x300] ss:$16 sps:$4 sm:$0xff]   ;;  %v5106_v16 = vld [vmem:[#allocation6 + $0x308] ss:$16 sps:$4 sm:$0xff]  }
 0x369   :  { %v1520_v1 = vcombine.low %v5955_v17, %v5958_v18  ;;  %v1458_v19 = vmax.f32 %v1457_v44, %v1262_v60  ;;  %v1725_v44 = vrot.slane %v5914_v12, %v1724_v6  ;;  %v1729_v58 = vrot.slane %v5914_v12, %v1728_v7  ;;  %v5114_v60 = vld [vmem:[#allocation6 + $0x32c] ss:$16 sps:$4 sm:$0xff]   ;;  %v5135_v17 = vld [vmem:[#allocation6 + $0x3a4] ss:$16 sps:$4 sm:$0xff]  }
 0x36a   :  { %v5138_v18 = vld [vmem:[#allocation6 + $0x3ac] ss:$16 sps:$4 sm:$0xff]   ;;  %v5147_v6 = vld [vmem:[#allocation6 + $0x3e4] ss:$16 sps:$4 sm:$0xff]  }
 0x36b   :  { %3432 = vmatpush1.bf16.msra.mxu0 %v5073_v20  ;;  %3596 = vmatpush1.bf16.msra.mxu1 %v5076_v53  ;;  %v1733_v20 = vrot.slane %v5914_v12, %v1732_v10  ;;  %v1546_v12 = vrot.slane %v1538_v33, %v5895_v42  ;;  %v5150_v7 = vld [vmem:[#allocation6 + $0x3ec] ss:$16 sps:$4 sm:$0xff]   ;;  %v4212_v32 = vld [vmem:[%s6150_s11 + $0x60] sm:$0xff] }
 0x36c   :  { %3433 = vmatprep.subr.bf16.mxu0 %v5081_v21  ;;  %3597 = vmatprep.subr.bf16.mxu1 %v5084_v23 }
 0x36d   :  { %v1266_v30 = vpop.f32.mrb[92].mxu1 }
 0x36e   :  { %v1447_v31 = vmax.f32 %v1446_v54, %v1266_v30  ;;  %v1268_v34 = vpop.f32.mrb[93].mxu1  ;;  %v5111_v54 = vld [vmem:[#allocation6 + $0x324] ss:$16 sps:$4 sm:$0xff]   ;;  %v5120_v30 = vld [vmem:[#allocation6 + $0x34c] ss:$16 sps:$4 sm:$0xff]  }
 0x36f   :  { %v1459_v35 = vmax.f32 %v1458_v19, %v1268_v34  ;;  %3434 = vmatpush1.bf16.msra.mxu0 %v5079_v41  ;;  %3598 = vmatpush1.bf16.msra.mxu1 %v5082_v25  ;;  %v1270_v36 = vpop.f32.mrb[94].mxu1  ;;  %v5109_v19 = vld [vmem:[#allocation6 + $0x320] ss:$16 sps:$4 sm:$0xff]   ;;  %v5112_v41 = vld [vmem:[#allocation6 + $0x328] ss:$16 sps:$4 sm:$0xff]   ;;  %v1751_v25 = vcombine.low %v1721_v8, %v1725_v44 }
 0x370   :  { %v1448_v38 = vmax.f32 %v1447_v31, %v1270_v36  ;;  %v1272_v39 = vpop.f32.mrb[95].mxu1  ;;  %3435 = vmatprep.subr.bf16.mxu0 %v5087_v26  ;;  %3599 = vmatprep.subr.bf16.mxu1 %v5090_v28  ;;  %v1752_v26 = vcombine.low %v1729_v58, %v1733_v20  ;;  %v5117_v28 = vld [vmem:[#allocation6 + $0x344] ss:$16 sps:$4 sm:$0xff]   ;;  %v5118_v36 = vld [vmem:[#allocation6 + $0x348] ss:$16 sps:$4 sm:$0xff]  }
 0x371   :  { %v1460_v45 = vmax.f32 %v1459_v35, %v1272_v39  ;;  %v5115_v35 = vld [vmem:[#allocation6 + $0x340] ss:$16 sps:$4 sm:$0xff]   ;;  %v5126_v39 = vld [vmem:[#allocation6 + $0x36c] ss:$16 sps:$4 sm:$0xff]   ;;  %v5159_v44 = vld [vmem:[#allocation6 + $0x424] ss:$16 sps:$4 sm:$0xff]  }
 0x372   :  { %v1449_v48 = vrot.slane %v1448_v38, 4  ;;  %v5151_v8 = vld [vmem:[#allocation6 + $0x400] ss:$16 sps:$4 sm:$0xff]   ;;  %v5162_v58 = vld [vmem:[#allocation6 + $0x42c] ss:$16 sps:$4 sm:$0xff]  }
 0x373   :  { %v1461_v49 = vrot.slane %v1460_v45, 4  ;;  %3436 = vmatpush1.bf16.msra.mxu0 %v5085_v37  ;;  %3600 = vmatpush1.bf16.msra.mxu1 %v5088_v47  ;;  %v1759_v37 = vrot.slane %v1751_v25, %v5895_v42  ;;  %v1766_v47 = vrot.slane %v1752_v26, %v5895_v42  ;;  %v5157_v20 = vld [vmem:[#allocation6 + $0x420] ss:$16 sps:$4 sm:$0xff]   ;;  %v5172_v25 = vld [vmem:[#allocation6 + $0x468] ss:$16 sps:$4 sm:$0xff]  }
 0x374   :  { %v1450_v55 = vmax.f32 %v1448_v38, %v1449_v48  ;;  %3437 = vmatprep.subr.bf16.mxu0 %v5093_v40  ;;  %3601 = vmatprep.subr.bf16.mxu1 %v5096_v0  ;;  %v5123_v38 = vld [vmem:[#allocation6 + $0x364] ss:$16 sps:$4 sm:$0xff]   ;;  %v5132_v48 = vld [vmem:[#allocation6 + $0x38c] ss:$16 sps:$4 sm:$0xff]  }
 0x375   :  { %v1462_v59 = vmax.f32 %v1460_v45, %v1461_v49  ;;  %v1767_v0 = vcombine.low %v1759_v37, %v1766_v47  ;;  %v5129_v45 = vld [vmem:[#allocation6 + $0x384] ss:$16 sps:$4 sm:$0xff]   ;;  %v5192_v47 = vld [vmem:[#allocation6 + $0x4cc] ss:$16 sps:$4 sm:$0xff]  }
 0x376   :  { %v1451_v61 = vrot.slane %v1450_v55, 2  ;;  %v5177_v26 = vld [vmem:[#allocation6 + $0x484] ss:$16 sps:$4 sm:$0xff]  }
 0x377   :  { %v1463_v4 = vrot.slane %v1462_v59, 2  ;;  %3438 = vmatpush1.bf16.msra.mxu0 %v5091_v51  ;;  %3602 = vmatpush1.bf16.msra.mxu1 %v5094_v52  ;;  %v5189_v37 = vld [vmem:[#allocation6 + $0x4c4] ss:$16 sps:$4 sm:$0xff]  }
 0x378   :  { %v1452_v63 = vmax.f32 %v1450_v55, %v1451_v61  ;;  %3439 = vmatprep.subr.bf16.mxu0 %v5099_v56  ;;  %3603 = vmatprep.subr.bf16.mxu1 %v5102_v57  ;;  %v5127_v55 = vld [vmem:[#allocation6 + $0x380] ss:$16 sps:$4 sm:$0xff]   ;;  %v5130_v56 = vld [vmem:[#allocation6 + $0x388] ss:$16 sps:$4 sm:$0xff]   ;;  %v5141_v61 = vld [vmem:[#allocation6 + $0x3c4] ss:$16 sps:$4 sm:$0xff]  }
 0x379   :  { %v1464_v11 = vmax.f32 %v1462_v59, %v1463_v4  ;;  %v5136_v59 = vld [vmem:[#allocation6 + $0x3a8] ss:$16 sps:$4 sm:$0xff]   ;;  %v5139_v4 = vld [vmem:[#allocation6 + $0x3c0] ss:$16 sps:$4 sm:$0xff]  }
 0x37a   :  { %v1453_v13 = vrot.slane %v1452_v63, 1 }
 0x37b   :  { %v1465_v9 = vrot.slane %v1464_v11, 1  ;;  %3440 = vmatpush1.bf16.msra.mxu0 %v5097_v62  ;;  %3604 = vmatpush1.bf16.msra.mxu1 %v5100_v5  ;;  %v5144_v62 = vld [vmem:[#allocation6 + $0x3cc] ss:$16 sps:$4 sm:$0xff]   ;;  %v5142_v5 = vld [vmem:[#allocation6 + $0x3c8] ss:$16 sps:$4 sm:$0xff]  }
 0x37c   :  { %v1454_v53 = vmax.f32 %v1452_v63, %v1453_v13  ;;  %3441 = vmatprep.subr.bf16.mxu0 %v5105_v3  ;;  %3605 = vmatprep.subr.bf16.mxu1 %v5108_v15  ;;  %v5145_v63 = vld [vmem:[#allocation6 + $0x3e0] ss:$16 sps:$4 sm:$0xff]   ;;  %v5148_v3 = vld [vmem:[#allocation6 + $0x3e8] ss:$16 sps:$4 sm:$0xff]   ;;  %v5153_v15 = vld [vmem:[#allocation6 + $0x404] ss:$16 sps:$4 sm:$0xff]  }
 0x37d   :  { %v1466_v21 = vmax.f32 %v1464_v11, %v1465_v9  ;;  %v5156_v11 = vld [vmem:[#allocation6 + $0x40c] ss:$16 sps:$4 sm:$0xff]   ;;  %v1820_v9 = vpack.c.bf16 %v5947_v27, %v5947_v27  ;;  %v5163_v27 = vld [vmem:[#allocation6 + $0x440] ss:$16 sps:$4 sm:$0xff]  }
 0x37f   :  { %v1539_v23 = vcombine.low %v1454_v53, %v1466_v21  ;;  %3442 = vmatpush1.bf16.msra.mxu0 %v5103_v14  ;;  %3606 = vmatpush1.bf16.msra.mxu1 %v5106_v16  ;;  %v5154_v14 = vld [vmem:[#allocation6 + $0x408] ss:$16 sps:$4 sm:$0xff]  }
 0x380   :  { %3443 = vmatprep.subr.bf16.mxu0 %v5111_v54  ;;  %3607 = vmatprep.subr.bf16.mxu1 %v5114_v60  ;;  %v5160_v53 = vld [vmem:[#allocation6 + $0x428] ss:$16 sps:$4 sm:$0xff]   ;;  %v5165_v54 = vld [vmem:[#allocation6 + $0x444] ss:$16 sps:$4 sm:$0xff]   ;;  %v5168_v60 = vld [vmem:[#allocation6 + $0x44c] ss:$16 sps:$4 sm:$0xff]  }
 0x381   :  { %v1553_v31 = vrot.slane %v1539_v23, %v5895_v42  ;;  %v5166_v21 = vld [vmem:[#allocation6 + $0x448] ss:$16 sps:$4 sm:$0xff]   ;;  %v5171_v23 = vld [vmem:[#allocation6 + $0x464] ss:$16 sps:$4 sm:$0xff]  }
 0x383   :  { %v1554_v34 = vcombine.low %v1546_v12, %v1553_v31  ;;  %3444 = vmatpush1.bf16.msra.mxu0 %v5109_v19  ;;  %3608 = vmatpush1.bf16.msra.mxu1 %v5112_v41  ;;  %v5174_v19 = vld [vmem:[#allocation6 + $0x46c] ss:$16 sps:$4 sm:$0xff]   ;;  %v5169_v41 = vld [vmem:[#allocation6 + $0x460] ss:$16 sps:$4 sm:$0xff]   ;;  %v5178_v12 = vld [vmem:[#allocation6 + $0x488] ss:$16 sps:$4 sm:$0xff]  }
 0x384   :  { %3445 = vmatprep.subr.bf16.mxu0 %v5117_v28  ;;  %3609 = vmatprep.subr.bf16.mxu1 %v5120_v30  ;;  %v5180_v28 = vld [vmem:[#allocation6 + $0x48c] ss:$16 sps:$4 sm:$0xff]   ;;  %v5175_v30 = vld [vmem:[#allocation6 + $0x480] ss:$16 sps:$4 sm:$0xff]   ;;  %v5183_v31 = vld [vmem:[#allocation6 + $0x4a4] ss:$16 sps:$4 sm:$0xff]  }
 0x385   :  { %v1570_v40 = vrot.slane %v1554_v34, 7  ;;  %v5186_v34 = vld [vmem:[#allocation6 + $0x4ac] ss:$16 sps:$4 sm:$0xff]  }
 0x387   :  { %3446 = vmatpush1.bf16.msra.mxu0 %v5115_v35  ;;  %3610 = vmatpush1.bf16.msra.mxu1 %v5118_v36  ;;  %v1571_v33 = vsel %vm1560_vm3, %v1570_v40, %v1520_v1  ;;  %v5133_v1 = vld [vmem:[#allocation6 + $0x3a0] ss:$16 sps:$4 sm:$0xff]   ;;  %v5184_v36 = vld [vmem:[#allocation6 + $0x4a8] ss:$16 sps:$4 sm:$0xff]  }
 0x388   :  { %3447 = vmatprep.subr.bf16.mxu0 %v5123_v38  ;;  %3611 = vmatprep.subr.bf16.mxu1 %v5126_v39  ;;  %v1572_v49 = vsel %vm1562_vm4, %v1570_v40, %v1571_v33  ;;  %v5181_v35 = vld [vmem:[#allocation6 + $0x4a0] ss:$16 sps:$4 sm:$0xff]   ;;  %v5190_v39 = vld [vmem:[#allocation6 + $0x4c8] ss:$16 sps:$4 sm:$0xff]  }
 0x389   :  { %v1573_v51 = vsel %vm1564_vm5, %v1570_v40, %v1572_v49  ;;  %v5187_v38 = vld [vmem:[#allocation6 + $0x4c0] ss:$16 sps:$4 sm:$0xff]   ;;  %v5196_v33 = vld [vmem:[#allocation6 + $0x4e8] ss:$16 sps:$4 sm:$0xff]  }
 0x38a   :  { %v1574_v52 = vsel %vm1566_vm6, %v1570_v40, %v1573_v51  ;;  %v5195_v40 = vld [vmem:[#allocation6 + $0x4e4] ss:$16 sps:$4 sm:$0xff]   ;;  %v5202_v49 = vld [vmem:[#allocation6 + $0x508] ss:$16 sps:$4 sm:$0xff]  }
 0x38b   :  { %3448 = vmatpush1.bf16.msra.mxu0 %v5121_v22  ;;  %3612 = vmatpush1.bf16.msra.mxu1 %v5124_v24  ;;  %v1771_v57 = vadd.f32 %v1767_v0, %v1574_v52  ;;  %v5198_v22 = vld [vmem:[#allocation6 + $0x4ec] ss:$16 sps:$4 sm:$0xff]   ;;  %v5193_v24 = vld [vmem:[#allocation6 + $0x4e0] ss:$16 sps:$4 sm:$0xff]   ;;  %v5201_v0 = vld [vmem:[#allocation6 + $0x504] ss:$16 sps:$4 sm:$0xff]  }
 0x38c   :  { %3449 = vmatprep.subr.bf16.mxu0 %v5129_v45  ;;  %3613 = vmatprep.subr.bf16.mxu1 %v5132_v48  ;;  %v5204_v45 = vld [vmem:[#allocation6 + $0x50c] ss:$16 sps:$4 sm:$0xff]   ;;  %v5199_v48 = vld [vmem:[#allocation6 + $0x500] ss:$16 sps:$4 sm:$0xff]   ;;  %v5207_v51 = vld [vmem:[#allocation6 + $0x524] ss:$16 sps:$4 sm:$0xff]  }
 0x38d   :  { %v5984_v2 = vmax.f32 %v1771_v57, 0.0  ;;  %v5210_v52 = vld [vmem:[#allocation6 + $0x52c] ss:$16 sps:$4 sm:$0xff]   ;;  %v5213_v57 = vld [vmem:[#allocation6 + $0x544] ss:$16 sps:$4 sm:$0xff]  }
 0x38f   :  { %3450 = vmatpush1.bf16.msra.mxu0 %v5127_v55  ;;  %3614 = vmatpush1.bf16.msra.mxu1 %v5130_v56  ;;  %v5988_v10 = vrot.slane %v5984_v2, %v5895_v42  ;;  %v5205_v55 = vld [vmem:[#allocation6 + $0x520] ss:$16 sps:$4 sm:$0xff]   ;;  %v5208_v56 = vld [vmem:[#allocation6 + $0x528] ss:$16 sps:$4 sm:$0xff]  }
 0x390   :  { %3451 = vmatprep.subr.bf16.mxu0 %v5135_v17  ;;  %3615 = vmatprep.subr.bf16.mxu1 %v5138_v18  ;;  %v5216_v17 = vld [vmem:[#allocation6 + $0x54c] ss:$16 sps:$4 sm:$0xff]   ;;  %v5211_v18 = vld [vmem:[#allocation6 + $0x540] ss:$16 sps:$4 sm:$0xff]  }
 0x391   :  { %v1808_v13 = vcombine.high %v5988_v10, %v5988_v10 }
 0x393   :  { %3452 = vmatpush1.bf16.msra.mxu0 %v5133_v1  ;;  %3616 = vmatpush1.bf16.msra.mxu1 %v5136_v59  ;;  %v1823_v16 = vpack.c.bf16 %v1808_v13, %v1808_v13  ;;  %v5214_v1 = vld [vmem:[#allocation6 + $0x548] ss:$16 sps:$4 sm:$0xff]   ;;  %v5219_v59 = vld [vmem:[#allocation6 + $0x564] ss:$16 sps:$4 sm:$0xff]  }
 0x394   :  { %3453 = vmatprep.subr.bf16.mxu0 %v5141_v61  ;;  %3617 = vmatprep.subr.bf16.mxu1 %v5144_v62  ;;  %v5222_v61 = vld [vmem:[#allocation6 + $0x56c] ss:$16 sps:$4 sm:$0xff]   ;;  %v5217_v62 = vld [vmem:[#allocation6 + $0x560] ss:$16 sps:$4 sm:$0xff]   ;;  %v5232_v13 = vld [vmem:[#allocation6 + $0x5a8] ss:$16 sps:$4 sm:$0xff]  }
 0x397   :  { %3454 = vmatpush1.bf16.msra.mxu0 %v5139_v4  ;;  %3618 = vmatpush1.bf16.msra.mxu1 %v5142_v5  ;;  %v5220_v4 = vld [vmem:[#allocation6 + $0x568] ss:$16 sps:$4 sm:$0xff]   ;;  %v5225_v5 = vld [vmem:[#allocation6 + $0x584] ss:$16 sps:$4 sm:$0xff]  }
 0x398   :  { %3455 = vmatprep.subr.bf16.mxu0 %v5147_v6  ;;  %3619 = vmatprep.subr.bf16.mxu1 %v5150_v7  ;;  %v5228_v6 = vld [vmem:[#allocation6 + $0x58c] ss:$16 sps:$4 sm:$0xff]   ;;  %v5223_v7 = vld [vmem:[#allocation6 + $0x580] ss:$16 sps:$4 sm:$0xff]  }
 0x39b   :  { %3456 = vmatpush1.bf16.msra.mxu0 %v5145_v63  ;;  %3620 = vmatpush1.bf16.msra.mxu1 %v5148_v3  ;;  %v5226_v63 = vld [vmem:[#allocation6 + $0x588] ss:$16 sps:$4 sm:$0xff]   ;;  %v5231_v3 = vld [vmem:[#allocation6 + $0x5a4] ss:$16 sps:$4 sm:$0xff]  }
 0x39c   :  { %3466 = vmatprep.subr.bf16.mxu0 %v5153_v15  ;;  %3630 = vmatprep.subr.bf16.mxu1 %v5156_v11  ;;  %v5234_v15 = vld [vmem:[#allocation6 + $0x5ac] ss:$16 sps:$4 sm:$0xff]   ;;  %v5229_v11 = vld [vmem:[#allocation6 + $0x5a0] ss:$16 sps:$4 sm:$0xff]  }
 0x39e   :  { %3458 = vmatmul.mubr.bf16.vlgmr.msra.gmra.mrb[60].mxu0 %v1820_v9  ;;  %3622 = vmatmul.mubr.bf16.vlgmr.msra.gmra.mrb[96].mxu1 %v1820_v9  ;;  %v5240_v9 = vld [vmem:[#allocation6 + $0x5cc] ss:$16 sps:$4 sm:$0xff]  }
 0x39f   :  { %3467 = vmatpush1.bf16.msra.mxu0 %v5151_v8  ;;  %3498 = vmatprep.mubr.bf16.mxu0 %v1823_v16  ;;  %v5237_v8 = vld [vmem:[#allocation6 + $0x5c4] ss:$16 sps:$4 sm:$0xff]  }
 0x3a0   :  { %3631 = vmatpush1.bf16.msra.mxu1 %v5154_v14  ;;  %3662 = vmatprep.mubr.bf16.mxu1 %v1823_v16  ;;  %v1793_v14 = vcombine.high %v5984_v2, %v5984_v2  ;;  %v5235_v16 = vld [vmem:[#allocation6 + $0x5c0] ss:$16 sps:$4 sm:$0xff]  }
 0x3a1   :  { %3468 = vmatprep.subr.bf16.mxu0 %v5159_v44  ;;  %3632 = vmatprep.subr.bf16.mxu1 %v5162_v58  ;;  %v5238_v44 = vld [vmem:[#allocation6 + $0x5c8] ss:$16 sps:$4 sm:$0xff]   ;;  %v5243_v58 = vld [vmem:[#allocation6 + $0x5e4] ss:$16 sps:$4 sm:$0xff]  }
 0x3a3   :  { %3469 = vmatpush1.bf16.msra.mxu0 %v5157_v20  ;;  %v5246_v20 = vld [vmem:[#allocation6 + $0x5ec] ss:$16 sps:$4 sm:$0xff]  }
 0x3a4   :  { %3633 = vmatpush1.bf16.msra.mxu1 %v5160_v53  ;;  %3470 = vmatprep.subr.bf16.mxu0 %v5165_v54  ;;  %v5997_v53 = vrot.slane %v1793_v14, %v5895_v42  ;;  %v5241_v54 = vld [vmem:[#allocation6 + $0x5e0] ss:$16 sps:$4 sm:$0xff]   ;;  %v5250_v42 = vld [vmem:[#allocation6 + $0x608] ss:$16 sps:$4 sm:$0xff]   ;;  %v5321_v14 = vld [vmem:[#allocation6 + $0x784] ss:$16 sps:$4 sm:$0xff]  }
 0x3a5   :  { %3634 = vmatprep.subr.bf16.mxu1 %v5168_v60  ;;  %v5244_v60 = vld [vmem:[#allocation6 + $0x5e8] ss:$16 sps:$4 sm:$0xff]  }
 0x3a6   :  { %v1809_v2 = vcombine.high %v5997_v53, %v5997_v53 }
 0x3a7   :  { %3471 = vmatpush1.bf16.msra.mxu0 %v5163_v27  ;;  %v5249_v27 = vld [vmem:[#allocation6 + $0x604] ss:$16 sps:$4 sm:$0xff]  }
 0x3a8   :  { %3635 = vmatpush1.bf16.msra.mxu1 %v5166_v21  ;;  %3472 = vmatprep.subr.bf16.mxu0 %v5171_v23  ;;  %v5252_v21 = vld [vmem:[#allocation6 + $0x60c] ss:$16 sps:$4 sm:$0xff]   ;;  %v5247_v23 = vld [vmem:[#allocation6 + $0x600] ss:$16 sps:$4 sm:$0xff]  }
 0x3a9   :  { %3636 = vmatprep.subr.bf16.mxu1 %v5174_v19  ;;  %v1822_v19 = vpack.c.bf16 %v5988_v10, %v5988_v10  ;;  %v5259_v10 = vld [vmem:[#allocation6 + $0x640] ss:$16 sps:$4 sm:$0xff]  }
 0x3ab   :  { %3473 = vmatpush1.bf16.msra.mxu0 %v5169_v41  ;;  %v5255_v41 = vld [vmem:[#allocation6 + $0x624] ss:$16 sps:$4 sm:$0xff]  }
 0x3ac   :  { %3637 = vmatpush1.bf16.msra.mxu1 %v5172_v25  ;;  %3474 = vmatprep.subr.bf16.mxu0 %v5177_v26  ;;  %v1825_v25 = vpack.c.bf16 %v1809_v2, %v1809_v2  ;;  %v5258_v26 = vld [vmem:[#allocation6 + $0x62c] ss:$16 sps:$4 sm:$0xff]  }
 0x3ad   :  { %3638 = vmatprep.subr.bf16.mxu1 %v5180_v28  ;;  %v5253_v28 = vld [vmem:[#allocation6 + $0x620] ss:$16 sps:$4 sm:$0xff]   ;;  %v5336_v2 = vld [vmem:[#allocation6 + $0x7cc] ss:$16 sps:$4 sm:$0xff]  }
 0x3af   :  { %3475 = vmatpush1.bf16.msra.mxu0 %v5175_v30  ;;  %v5256_v30 = vld [vmem:[#allocation6 + $0x628] ss:$16 sps:$4 sm:$0xff]  }
 0x3b0   :  { %3639 = vmatpush1.bf16.msra.mxu1 %v5178_v12  ;;  %3476 = vmatprep.subr.bf16.mxu0 %v5183_v31  ;;  %v5261_v12 = vld [vmem:[#allocation6 + $0x644] ss:$16 sps:$4 sm:$0xff]   ;;  %v5264_v31 = vld [vmem:[#allocation6 + $0x64c] ss:$16 sps:$4 sm:$0xff]  }
 0x3b1   :  { %3640 = vmatprep.subr.bf16.mxu1 %v5186_v34  ;;  %v5262_v34 = vld [vmem:[#allocation6 + $0x648] ss:$16 sps:$4 sm:$0xff]  }
 0x3b3   :  { %3477 = vmatpush1.bf16.msra.mxu0 %v5181_v35  ;;  %v5267_v35 = vld [vmem:[#allocation6 + $0x664] ss:$16 sps:$4 sm:$0xff]  }
 0x3b4   :  { %3641 = vmatpush1.bf16.msra.mxu1 %v5184_v36  ;;  %3478 = vmatprep.subr.bf16.mxu0 %v5189_v37  ;;  %v5270_v36 = vld [vmem:[#allocation6 + $0x66c] ss:$16 sps:$4 sm:$0xff]   ;;  %v5265_v37 = vld [vmem:[#allocation6 + $0x660] ss:$16 sps:$4 sm:$0xff]  }
 0x3b5   :  { %3642 = vmatprep.subr.bf16.mxu1 %v5192_v47  ;;  %v5268_v47 = vld [vmem:[#allocation6 + $0x668] ss:$16 sps:$4 sm:$0xff]  }
 0x3b7   :  { %3479 = vmatpush1.bf16.msra.mxu0 %v5187_v38  ;;  %v5273_v38 = vld [vmem:[#allocation6 + $0x684] ss:$16 sps:$4 sm:$0xff]  }
 0x3b8   :  { %3643 = vmatpush1.bf16.msra.mxu1 %v5190_v39  ;;  %3480 = vmatprep.subr.bf16.mxu0 %v5195_v40  ;;  %v5276_v39 = vld [vmem:[#allocation6 + $0x68c] ss:$16 sps:$4 sm:$0xff]   ;;  %v5271_v40 = vld [vmem:[#allocation6 + $0x680] ss:$16 sps:$4 sm:$0xff]  }
 0x3b9   :  { %3644 = vmatprep.subr.bf16.mxu1 %v5198_v22  ;;  %v5274_v22 = vld [vmem:[#allocation6 + $0x688] ss:$16 sps:$4 sm:$0xff]  }
 0x3bb   :  { %3481 = vmatpush1.bf16.msra.mxu0 %v5193_v24  ;;  %v5279_v24 = vld [vmem:[#allocation6 + $0x6a4] ss:$16 sps:$4 sm:$0xff]  }
 0x3bc   :  { %3645 = vmatpush1.bf16.msra.mxu1 %v5196_v33  ;;  %3482 = vmatprep.subr.bf16.mxu0 %v5201_v0  ;;  %v5282_v33 = vld [vmem:[#allocation6 + $0x6ac] ss:$16 sps:$4 sm:$0xff]   ;;  %v5277_v0 = vld [vmem:[#allocation6 + $0x6a0] ss:$16 sps:$4 sm:$0xff]  }
 0x3bd   :  { %3646 = vmatprep.subr.bf16.mxu1 %v5204_v45  ;;  %v5280_v45 = vld [vmem:[#allocation6 + $0x6a8] ss:$16 sps:$4 sm:$0xff]  }
 0x3bf   :  { %3483 = vmatpush1.bf16.msra.mxu0 %v5199_v48  ;;  %v5285_v48 = vld [vmem:[#allocation6 + $0x6c4] ss:$16 sps:$4 sm:$0xff]  }
 0x3c0   :  { %3647 = vmatpush1.bf16.msra.mxu1 %v5202_v49  ;;  %3484 = vmatprep.subr.bf16.mxu0 %v5207_v51  ;;  %v5288_v49 = vld [vmem:[#allocation6 + $0x6cc] ss:$16 sps:$4 sm:$0xff]   ;;  %v5283_v51 = vld [vmem:[#allocation6 + $0x6c0] ss:$16 sps:$4 sm:$0xff]  }
 0x3c1   :  { %3648 = vmatprep.subr.bf16.mxu1 %v5210_v52  ;;  %v5286_v52 = vld [vmem:[#allocation6 + $0x6c8] ss:$16 sps:$4 sm:$0xff]  }
 0x3c3   :  { %3485 = vmatpush1.bf16.msra.mxu0 %v5205_v55  ;;  %v5291_v55 = vld [vmem:[#allocation6 + $0x6e4] ss:$16 sps:$4 sm:$0xff]  }
 0x3c4   :  { %3649 = vmatpush1.bf16.msra.mxu1 %v5208_v56  ;;  %3486 = vmatprep.subr.bf16.mxu0 %v5213_v57  ;;  %v5294_v56 = vld [vmem:[#allocation6 + $0x6ec] ss:$16 sps:$4 sm:$0xff]   ;;  %v5289_v57 = vld [vmem:[#allocation6 + $0x6e0] ss:$16 sps:$4 sm:$0xff]  }
 0x3c5   :  { %3650 = vmatprep.subr.bf16.mxu1 %v5216_v17  ;;  %v5292_v17 = vld [vmem:[#allocation6 + $0x6e8] ss:$16 sps:$4 sm:$0xff]  }
 0x3c7   :  { %3487 = vmatpush1.bf16.msra.mxu0 %v5211_v18  ;;  %v5297_v18 = vld [vmem:[#allocation6 + $0x704] ss:$16 sps:$4 sm:$0xff]  }
 0x3c8   :  { %3651 = vmatpush1.bf16.msra.mxu1 %v5214_v1  ;;  %3488 = vmatprep.subr.bf16.mxu0 %v5219_v59  ;;  %v5300_v1 = vld [vmem:[#allocation6 + $0x70c] ss:$16 sps:$4 sm:$0xff]   ;;  %v5295_v59 = vld [vmem:[#allocation6 + $0x700] ss:$16 sps:$4 sm:$0xff]  }
 0x3c9   :  { %3652 = vmatprep.subr.bf16.mxu1 %v5222_v61  ;;  %v5298_v61 = vld [vmem:[#allocation6 + $0x708] ss:$16 sps:$4 sm:$0xff]  }
 0x3cb   :  { %3489 = vmatpush1.bf16.msra.mxu0 %v5217_v62  ;;  %v5303_v62 = vld [vmem:[#allocation6 + $0x724] ss:$16 sps:$4 sm:$0xff]  }
 0x3cc   :  { %3653 = vmatpush1.bf16.msra.mxu1 %v5220_v4  ;;  %3490 = vmatprep.subr.bf16.mxu0 %v5225_v5  ;;  %v5306_v4 = vld [vmem:[#allocation6 + $0x72c] ss:$16 sps:$4 sm:$0xff]   ;;  %v5301_v5 = vld [vmem:[#allocation6 + $0x720] ss:$16 sps:$4 sm:$0xff]  }
 0x3cd   :  { %3654 = vmatprep.subr.bf16.mxu1 %v5228_v6  ;;  %v5304_v6 = vld [vmem:[#allocation6 + $0x728] ss:$16 sps:$4 sm:$0xff]  }
 0x3cf   :  { %3491 = vmatpush1.bf16.msra.mxu0 %v5223_v7  ;;  %v5309_v7 = vld [vmem:[#allocation6 + $0x744] ss:$16 sps:$4 sm:$0xff]  }
 0x3d0   :  { %3655 = vmatpush1.bf16.msra.mxu1 %v5226_v63  ;;  %3492 = vmatprep.subr.bf16.mxu0 %v5231_v3  ;;  %v5312_v63 = vld [vmem:[#allocation6 + $0x74c] ss:$16 sps:$4 sm:$0xff]   ;;  %v5307_v3 = vld [vmem:[#allocation6 + $0x740] ss:$16 sps:$4 sm:$0xff]  }
 0x3d1   :  { %3656 = vmatprep.subr.bf16.mxu1 %v5234_v15  ;;  %v5310_v15 = vld [vmem:[#allocation6 + $0x748] ss:$16 sps:$4 sm:$0xff]  }
 0x3d3   :  { %3493 = vmatpush1.bf16.msra.mxu0 %v5229_v11  ;;  %v5315_v11 = vld [vmem:[#allocation6 + $0x764] ss:$16 sps:$4 sm:$0xff]  }
 0x3d4   :  { %3657 = vmatpush1.bf16.msra.mxu1 %v5232_v13  ;;  %3494 = vmatprep.subr.bf16.mxu0 %v5237_v8  ;;  %v5318_v13 = vld [vmem:[#allocation6 + $0x76c] ss:$16 sps:$4 sm:$0xff]   ;;  %v5313_v8 = vld [vmem:[#allocation6 + $0x760] ss:$16 sps:$4 sm:$0xff]  }
 0x3d5   :  { %3658 = vmatprep.subr.bf16.mxu1 %v5240_v9  ;;  %v5316_v9 = vld [vmem:[#allocation6 + $0x768] ss:$16 sps:$4 sm:$0xff]  }
 0x3d7   :  { %3495 = vmatpush1.bf16.msra.mxu0 %v5235_v16  ;;  %v5324_v16 = vld [vmem:[#allocation6 + $0x78c] ss:$16 sps:$4 sm:$0xff]  }
 0x3d8   :  { %3659 = vmatpush1.bf16.msra.mxu1 %v5238_v44  ;;  %3496 = vmatprep.subr.bf16.mxu0 %v5243_v58  ;;  %v5319_v44 = vld [vmem:[#allocation6 + $0x780] ss:$16 sps:$4 sm:$0xff]   ;;  %v5322_v58 = vld [vmem:[#allocation6 + $0x788] ss:$16 sps:$4 sm:$0xff]  }
 0x3d9   :  { %3660 = vmatprep.subr.bf16.mxu1 %v5246_v20  ;;  %v5327_v20 = vld [vmem:[#allocation6 + $0x7a4] ss:$16 sps:$4 sm:$0xff]  }
 0x3db   :  { %3497 = vmatpush1.bf16.msra.mxu0 %v5241_v54  ;;  %v5330_v54 = vld [vmem:[#allocation6 + $0x7ac] ss:$16 sps:$4 sm:$0xff]  }
 0x3dc   :  { %3661 = vmatpush1.bf16.msra.mxu1 %v5244_v60  ;;  %3507 = vmatprep.subr.bf16.mxu0 %v5249_v27  ;;  %v5325_v60 = vld [vmem:[#allocation6 + $0x7a0] ss:$16 sps:$4 sm:$0xff]   ;;  %v5328_v27 = vld [vmem:[#allocation6 + $0x7a8] ss:$16 sps:$4 sm:$0xff]  }
 0x3dd   :  { %3671 = vmatprep.subr.bf16.mxu1 %v5252_v21  ;;  %v5333_v21 = vld [vmem:[#allocation6 + $0x7c4] ss:$16 sps:$4 sm:$0xff]  }
 0x3de   :  { %3499 = vmatmul.mubr.bf16.vlgmr.msra.gmra.mrb[60].mxu0 %v1822_v19 }
 0x3df   :  { %3663 = vmatmul.mubr.bf16.vlgmr.msra.gmra.mrb[96].mxu1 %v1822_v19  ;;  %3508 = vmatpush1.bf16.msra.mxu0 %v5247_v23  ;;  %v5331_v23 = vld [vmem:[#allocation6 + $0x7c0] ss:$16 sps:$4 sm:$0xff]   ;;  %v5334_v19 = vld [vmem:[#allocation6 + $0x7c8] ss:$16 sps:$4 sm:$0xff]  }
 0x3e0   :  { %3539 = vmatprep.mubr.bf16.mxu0 %v1825_v25  ;;  %3672 = vmatpush1.bf16.msra.mxu1 %v5250_v42  ;;  %v5339_v42 = vld [vmem:[#allocation6 + $0x7e4] ss:$16 sps:$4 sm:$0xff]  }
 0x3e1   :  { %3703 = vmatprep.mubr.bf16.mxu1 %v1825_v25  ;;  %3509 = vmatprep.subr.bf16.mxu0 %v5255_v41  ;;  %v5342_v41 = vld [vmem:[#allocation6 + $0x7ec] ss:$16 sps:$4 sm:$0xff]   ;;  %v5337_v25 = vld [vmem:[#allocation6 + $0x7e0] ss:$16 sps:$4 sm:$0xff]  }
 0x3e2   :  { %3673 = vmatprep.subr.bf16.mxu1 %v5258_v26  ;;  %v5340_v26 = vld [vmem:[#allocation6 + $0x7e8] ss:$16 sps:$4 sm:$0xff]  }
 0x3e3   :  { %3510 = vmatpush1.bf16.msra.mxu0 %v5253_v28  ;;  %v5345_v28 = vld [vmem:[#allocation8 + $0x4] ss:$8 sps:$4 sm:$0xff]  }
 0x3e4   :  { %3674 = vmatpush1.bf16.msra.mxu1 %v5256_v30  ;;  %3511 = vmatprep.subr.bf16.mxu0 %v5261_v12  ;;  %v5343_v30 = vld [vmem:[#allocation8] ss:$8 sps:$4 sm:$0xff]   ;;  %v1824_v12 = vpack.c.bf16 %v5997_v53, %v5997_v53  ;;  %v5360_v53 = vld [vmem:[#allocation8 + $0x54] ss:$8 sps:$4 sm:$0xff]  }
 0x3e5   :  { %3675 = vmatprep.subr.bf16.mxu1 %v5264_v31  ;;  %v5348_v31 = vld [vmem:[#allocation8 + $0x14] ss:$8 sps:$4 sm:$0xff]  }
 0x3e7   :  { %3512 = vmatpush1.bf16.msra.mxu0 %v5259_v10  ;;  %v5346_v10 = vld [vmem:[#allocation8 + $0x10] ss:$8 sps:$4 sm:$0xff]  }
 0x3e8   :  { %3676 = vmatpush1.bf16.msra.mxu1 %v5262_v34  ;;  %3513 = vmatprep.subr.bf16.mxu0 %v5267_v35  ;;  %v5351_v34 = vld [vmem:[#allocation8 + $0x24] ss:$8 sps:$4 sm:$0xff]   ;;  %v5349_v35 = vld [vmem:[#allocation8 + $0x20] ss:$8 sps:$4 sm:$0xff]  }
 0x3e9   :  { %3677 = vmatprep.subr.bf16.mxu1 %v5270_v36  ;;  %v5354_v36 = vld [vmem:[#allocation8 + $0x34] ss:$8 sps:$4 sm:$0xff]  }
 0x3eb   :  { %3514 = vmatpush1.bf16.msra.mxu0 %v5265_v37  ;;  %v5352_v37 = vld [vmem:[#allocation8 + $0x30] ss:$8 sps:$4 sm:$0xff]  }
 0x3ec   :  { %3678 = vmatpush1.bf16.msra.mxu1 %v5268_v47  ;;  %3515 = vmatprep.subr.bf16.mxu0 %v5273_v38  ;;  %v5357_v47 = vld [vmem:[#allocation8 + $0x44] ss:$8 sps:$4 sm:$0xff]   ;;  %v5355_v38 = vld [vmem:[#allocation8 + $0x40] ss:$8 sps:$4 sm:$0xff]  }
 0x3ed   :  { %3679 = vmatprep.subr.bf16.mxu1 %v5276_v39  ;;  %v5358_v39 = vld [vmem:[#allocation8 + $0x50] ss:$8 sps:$4 sm:$0xff]  }
 0x3ef   :  { %3516 = vmatpush1.bf16.msra.mxu0 %v5271_v40  ;;  %v5363_v40 = vld [vmem:[#allocation8 + $0x64] ss:$8 sps:$4 sm:$0xff]  }
 0x3f0   :  { %3680 = vmatpush1.bf16.msra.mxu1 %v5274_v22  ;;  %3517 = vmatprep.subr.bf16.mxu0 %v5279_v24  ;;  %v5361_v22 = vld [vmem:[#allocation8 + $0x60] ss:$8 sps:$4 sm:$0xff]   ;;  %v5366_v24 = vld [vmem:[#allocation8 + $0x74] ss:$8 sps:$4 sm:$0xff]  }
 0x3f1   :  { %3681 = vmatprep.subr.bf16.mxu1 %v5282_v33  ;;  %v5364_v33 = vld [vmem:[#allocation8 + $0x70] ss:$8 sps:$4 sm:$0xff]  }
 0x3f3   :  { %3518 = vmatpush1.bf16.msra.mxu0 %v5277_v0  ;;  %v5369_v0 = vld [vmem:[#allocation8 + $0x84] ss:$8 sps:$4 sm:$0xff]  }
 0x3f4   :  { %3682 = vmatpush1.bf16.msra.mxu1 %v5280_v45  ;;  %3519 = vmatprep.subr.bf16.mxu0 %v5285_v48  ;;  %v5367_v45 = vld [vmem:[#allocation8 + $0x80] ss:$8 sps:$4 sm:$0xff]   ;;  %v5372_v48 = vld [vmem:[#allocation8 + $0x94] ss:$8 sps:$4 sm:$0xff]  }
 0x3f5   :  { %3683 = vmatprep.subr.bf16.mxu1 %v5288_v49  ;;  %v5370_v49 = vld [vmem:[#allocation8 + $0x90] ss:$8 sps:$4 sm:$0xff]  }
 0x3f7   :  { %3520 = vmatpush1.bf16.msra.mxu0 %v5283_v51  ;;  %v5375_v51 = vld [vmem:[#allocation8 + $0xa4] ss:$8 sps:$4 sm:$0xff]  }
 0x3f8   :  { %3684 = vmatpush1.bf16.msra.mxu1 %v5286_v52  ;;  %3521 = vmatprep.subr.bf16.mxu0 %v5291_v55  ;;  %v5373_v52 = vld [vmem:[#allocation8 + $0xa0] ss:$8 sps:$4 sm:$0xff]   ;;  %v5378_v55 = vld [vmem:[#allocation8 + $0xb4] ss:$8 sps:$4 sm:$0xff]  }
 0x3f9   :  { %3685 = vmatprep.subr.bf16.mxu1 %v5294_v56  ;;  %v5376_v56 = vld [vmem:[#allocation8 + $0xb0] ss:$8 sps:$4 sm:$0xff]  }
 0x3fb   :  { %3522 = vmatpush1.bf16.msra.mxu0 %v5289_v57  ;;  %v5381_v57 = vld [vmem:[#allocation8 + $0xc4] ss:$8 sps:$4 sm:$0xff]  }
 0x3fc   :  { %3686 = vmatpush1.bf16.msra.mxu1 %v5292_v17  ;;  %3523 = vmatprep.subr.bf16.mxu0 %v5297_v18  ;;  %v5379_v17 = vld [vmem:[#allocation8 + $0xc0] ss:$8 sps:$4 sm:$0xff]   ;;  %v5384_v18 = vld [vmem:[#allocation8 + $0xd4] ss:$8 sps:$4 sm:$0xff]  }
 0x3fd   :  { %3687 = vmatprep.subr.bf16.mxu1 %v5300_v1  ;;  %v5382_v1 = vld [vmem:[#allocation8 + $0xd0] ss:$8 sps:$4 sm:$0xff]  }
 0x3ff   :  { %3524 = vmatpush1.bf16.msra.mxu0 %v5295_v59  ;;  %v5387_v59 = vld [vmem:[#allocation8 + $0xe4] ss:$8 sps:$4 sm:$0xff]  }
 0x400   :  { %3688 = vmatpush1.bf16.msra.mxu1 %v5298_v61  ;;  %3525 = vmatprep.subr.bf16.mxu0 %v5303_v62  ;;  %v5385_v61 = vld [vmem:[#allocation8 + $0xe0] ss:$8 sps:$4 sm:$0xff]   ;;  %v5390_v62 = vld [vmem:[#allocation8 + $0xf4] ss:$8 sps:$4 sm:$0xff]  }
 0x401   :  { %3689 = vmatprep.subr.bf16.mxu1 %v5306_v4  ;;  %v5388_v4 = vld [vmem:[#allocation8 + $0xf0] ss:$8 sps:$4 sm:$0xff]  }
 0x403   :  { %3526 = vmatpush1.bf16.msra.mxu0 %v5301_v5  ;;  %v5393_v5 = vld [vmem:[#allocation8 + $0x104] ss:$8 sps:$4 sm:$0xff]  }
 0x404   :  { %3690 = vmatpush1.bf16.msra.mxu1 %v5304_v6  ;;  %3527 = vmatprep.subr.bf16.mxu0 %v5309_v7  ;;  %v4216_v6 = vld [vmem:[%s6150_s11 + $0x80] sm:$0xff]  ;;  %v4217_v7 = vld [vmem:[%s6150_s11 + $0x88] sm:$0xff] }
 0x405   :  { %3691 = vmatprep.subr.bf16.mxu1 %v5312_v63  ;;  %v4200_v63 = vld [vmem:[%s6150_s11] sm:$0xff] }
 0x407   :  { %3528 = vmatpush1.bf16.msra.mxu0 %v5307_v3  ;;  %v4859_v3 = vpack.c.bf16 %v4217_v7, %v4216_v6  ;;  %v5396_v7 = vld [vmem:[#allocation8 + $0x114] ss:$8 sps:$4 sm:$0xff]  }
 0x408   :  { %3692 = vmatpush1.bf16.msra.mxu1 %v5310_v15  ;;  %3529 = vmatprep.subr.bf16.mxu0 %v5315_v11  ;;  %v4201_v15 = vld [vmem:[%s6150_s11 + $0x8] sm:$0xff]  ;;  %v4218_v11 = vld [vmem:[%s6150_s11 + $0x90] sm:$0xff] }
 0x409   :  { %3693 = vmatprep.subr.bf16.mxu1 %v5318_v13  ;;  %v4219_v13 = vld [vmem:[%s6150_s11 + $0x98] sm:$0xff] }
 0x40b   :  { %3530 = vmatpush1.bf16.msra.mxu0 %v5313_v8  ;;  %v4861_v8 = vpack.c.bf16 %v4201_v15, %v4200_v63  ;;  %v5394_v63 = vld [vmem:[#allocation8 + $0x110] ss:$8 sps:$4 sm:$0xff]   ;;  %v5397_v15 = vld [vmem:[#allocation8 + $0x120] ss:$8 sps:$4 sm:$0xff]  }
 0x40c   :  { %3694 = vmatpush1.bf16.msra.mxu1 %v5316_v9  ;;  %3531 = vmatprep.subr.bf16.mxu0 %v5321_v14  ;;  %v4863_v9 = vpack.c.bf16 %v4219_v13, %v4218_v11  ;;  %v4202_v14 = vld [vmem:[%s6150_s11 + $0x10] sm:$0xff]  ;;  %v5402_v11 = vld [vmem:[#allocation8 + $0x134] ss:$8 sps:$4 sm:$0xff]   ;;  %v5400_v13 = vld [vmem:[#allocation8 + $0x130] ss:$8 sps:$4 sm:$0xff]  }
 0x40d   :  { %3695 = vmatprep.subr.bf16.mxu1 %v5324_v16  ;;  %v4203_v16 = vld [vmem:[%s6150_s11 + $0x18] sm:$0xff] }
 0x40f   :  { %3532 = vmatpush1.bf16.msra.mxu0 %v5319_v44  ;;  %v4220_v44 = vld [vmem:[%s6150_s11 + $0xa0] sm:$0xff] }
 0x410   :  { %3696 = vmatpush1.bf16.msra.mxu1 %v5322_v58  ;;  %3533 = vmatprep.subr.bf16.mxu0 %v5327_v20  ;;  %v4221_v58 = vld [vmem:[%s6150_s11 + $0xa8] sm:$0xff]  ;;  %v4865_v20 = vpack.c.bf16 %v4203_v16, %v4202_v14 }
 0x411   :  { %3697 = vmatprep.subr.bf16.mxu1 %v5330_v54  ;;  %v4867_v54 = vpack.c.bf16 %v4221_v58, %v4220_v44  ;;  %v5408_v14 = vld [vmem:[#allocation8 + $0x154] ss:$8 sps:$4 sm:$0xff]   ;;  %v5406_v16 = vld [vmem:[#allocation8 + $0x150] ss:$8 sps:$4 sm:$0xff]   ;;  %v5411_v44 = vld [vmem:[#allocation8 + $0x164] ss:$8 sps:$4 sm:$0xff]  }
 0x412   :  { %v5409_v58 = vld [vmem:[#allocation8 + $0x160] ss:$8 sps:$4 sm:$0xff]  }
 0x413   :  { %3534 = vmatpush1.bf16.msra.mxu0 %v5325_v60  ;;  %v4204_v60 = vld [vmem:[%s6150_s11 + $0x20] sm:$0xff] }
 0x414   :  { %3698 = vmatpush1.bf16.msra.mxu1 %v5328_v27  ;;  %3535 = vmatprep.subr.bf16.mxu0 %v5333_v21  ;;  %v4205_v27 = vld [vmem:[%s6150_s11 + $0x28] sm:$0xff]  ;;  %v4222_v21 = vld [vmem:[%s6150_s11 + $0xb0] sm:$0xff] }
 0x415   :  { %3699 = vmatprep.subr.bf16.mxu1 %v5336_v2  ;;  %v4223_v2 = vld [vmem:[%s6150_s11 + $0xb8] sm:$0xff] }
 0x417   :  { %3536 = vmatpush1.bf16.msra.mxu0 %v5331_v23  ;;  %v4869_v23 = vpack.c.bf16 %v4205_v27, %v4204_v60  ;;  %v5417_v60 = vld [vmem:[#allocation8 + $0x184] ss:$8 sps:$4 sm:$0xff]   ;;  %v5415_v27 = vld [vmem:[#allocation8 + $0x180] ss:$8 sps:$4 sm:$0xff]  }
 0x418   :  { %3700 = vmatpush1.bf16.msra.mxu1 %v5334_v19  ;;  %3537 = vmatprep.subr.bf16.mxu0 %v5339_v42  ;;  %v4871_v19 = vpack.c.bf16 %v4223_v2, %v4222_v21  ;;  %v4206_v42 = vld [vmem:[%s6150_s11 + $0x30] sm:$0xff]  ;;  %v5420_v21 = vld [vmem:[#allocation8 + $0x194] ss:$8 sps:$4 sm:$0xff]   ;;  %v5418_v2 = vld [vmem:[#allocation8 + $0x190] ss:$8 sps:$4 sm:$0xff]  }
 0x419   :  { %3701 = vmatprep.subr.bf16.mxu1 %v5342_v41  ;;  %v4207_v41 = vld [vmem:[%s6150_s11 + $0x38] sm:$0xff] }
 0x41b   :  { %3538 = vmatpush1.bf16.msra.mxu0 %v5337_v25  ;;  %v4224_v25 = vld [vmem:[%s6150_s11 + $0xc0] sm:$0xff] }
 0x41c   :  { %3702 = vmatpush1.bf16.msra.mxu1 %v5340_v26  ;;  %4116 = vmatprep.subr.bf16.mxu0 %v5345_v28  ;;  %v4225_v26 = vld [vmem:[%s6150_s11 + $0xc8] sm:$0xff]  ;;  %v4873_v28 = vpack.c.bf16 %v4207_v41, %v4206_v42 }
 0x41d   :  { %4860 = vmatprep.subr.bf16.mxu1 %v4859_v3  ;;  %v5399_v3 = vld [vmem:[#allocation8 + $0x124] ss:$8 sps:$4 sm:$0xff]   ;;  %v5426_v42 = vld [vmem:[#allocation8 + $0x1b4] ss:$8 sps:$4 sm:$0xff]   ;;  %v5424_v41 = vld [vmem:[#allocation8 + $0x1b0] ss:$8 sps:$4 sm:$0xff]  }
 0x41e   :  { %3540 = vmatmul.mubr.bf16.vlgmr.msra.gmra.mrb[60].mxu0 %v1824_v12 }
 0x41f   :  { %3704 = vmatmul.mubr.bf16.vlgmr.msra.gmra.mrb[96].mxu1 %v1824_v12  ;;  %4117 = vmatpush1.bf16.msra.mxu0 %v5343_v30  ;;  %v4875_v30 = vpack.c.bf16 %v4225_v26, %v4224_v25  ;;  %v4208_v12 = vld [vmem:[%s6150_s11 + $0x40] sm:$0xff]  ;;  %v5429_v25 = vld [vmem:[#allocation8 + $0x1c4] ss:$8 sps:$4 sm:$0xff]   ;;  %v5427_v26 = vld [vmem:[#allocation8 + $0x1c0] ss:$8 sps:$4 sm:$0xff]  }
 0x420   :  { %4118 = vmatprep.subr.bf16.mxu0 %v5348_v31  ;;  %4862 = vmatpush3.bf16.msra.mxu1 %v4861_v8  ;;  %v4209_v31 = vld [vmem:[%s6150_s11 + $0x48] sm:$0xff]  ;;  %v5405_v8 = vld [vmem:[#allocation8 + $0x144] ss:$8 sps:$4 sm:$0xff]  }
 0x421   :  { %4864 = vmatprep.subr.bf16.mxu1 %v4863_v9  ;;  %v5403_v9 = vld [vmem:[#allocation8 + $0x140] ss:$8 sps:$4 sm:$0xff]  }
 0x423   :  { %4119 = vmatpush1.bf16.msra.mxu0 %v5346_v10  ;;  %v4226_v10 = vld [vmem:[%s6150_s11 + $0xd0] sm:$0xff] }
 0x424   :  { %4120 = vmatprep.subr.bf16.mxu0 %v5351_v34  ;;  %4866 = vmatpush3.bf16.msra.mxu1 %v4865_v20  ;;  %v4227_v34 = vld [vmem:[%s6150_s11 + $0xd8] sm:$0xff]  ;;  %v5414_v20 = vld [vmem:[#allocation8 + $0x174] ss:$8 sps:$4 sm:$0xff]  }
 0x425   :  { %4868 = vmatprep.subr.bf16.mxu1 %v4867_v54  ;;  %v5412_v54 = vld [vmem:[#allocation8 + $0x170] ss:$8 sps:$4 sm:$0xff]  }
 0x427   :  { %4121 = vmatpush1.bf16.msra.mxu0 %v5349_v35  ;;  %v4877_v35 = vpack.c.bf16 %v4209_v31, %v4208_v12  ;;  %v5435_v31 = vld [vmem:[#allocation8 + $0x1e4] ss:$8 sps:$4 sm:$0xff]  }
 0x428   :  { %4122 = vmatprep.subr.bf16.mxu0 %v5354_v36  ;;  %4870 = vmatpush3.bf16.msra.mxu1 %v4869_v23  ;;  %v4879_v36 = vpack.c.bf16 %v4227_v34, %v4226_v10  ;;  %v5423_v23 = vld [vmem:[#allocation8 + $0x1a4] ss:$8 sps:$4 sm:$0xff]   ;;  %v5433_v10 = vld [vmem:[#allocation8 + $0x1e0] ss:$8 sps:$4 sm:$0xff]  }
 0x429   :  { %4872 = vmatprep.subr.bf16.mxu1 %v4871_v19  ;;  %v5421_v19 = vld [vmem:[#allocation8 + $0x1a0] ss:$8 sps:$4 sm:$0xff]  }
 0x42b   :  { %4123 = vmatpush1.bf16.msra.mxu0 %v5352_v37  ;;  %v4210_v37 = vld [vmem:[%s6150_s11 + $0x50] sm:$0xff] }
 0x42c   :  { %4124 = vmatprep.subr.bf16.mxu0 %v5357_v47  ;;  %4874 = vmatpush3.bf16.msra.mxu1 %v4873_v28  ;;  %v4211_v47 = vld [vmem:[%s6150_s11 + $0x58] sm:$0xff]  ;;  %v5432_v28 = vld [vmem:[#allocation8 + $0x1d4] ss:$8 sps:$4 sm:$0xff]  }
 0x42d   :  { %4876 = vmatprep.subr.bf16.mxu1 %v4875_v30  ;;  %v5430_v30 = vld [vmem:[#allocation8 + $0x1d0] ss:$8 sps:$4 sm:$0xff]  }
 0x42f   :  { %4125 = vmatpush1.bf16.msra.mxu0 %v5355_v38  ;;  %v4228_v38 = vld [vmem:[%s6150_s11 + $0xe0] sm:$0xff] }
 0x430   :  { %4126 = vmatprep.subr.bf16.mxu0 %v5360_v53  ;;  %v4229_v53 = vld [vmem:[%s6150_s11 + $0xe8] sm:$0xff]  ;;  %4878 = vmatpush3.bf16.msra.mxu1 %v4877_v35 }
 0x431   :  { %4880 = vmatprep.subr.bf16.mxu1 %v4879_v36  ;;  %v5438_v35 = vld [vmem:[#allocation8 + $0x1f4] ss:$8 sps:$4 sm:$0xff]   ;;  %v5436_v36 = vld [vmem:[#allocation8 + $0x1f0] ss:$8 sps:$4 sm:$0xff]  }
 0x433   :  { %4127 = vmatpush1.bf16.msra.mxu0 %v5358_v39  ;;  %v4881_v39 = vpack.c.bf16 %v4211_v47, %v4210_v37 }
 0x434   :  { %4128 = vmatprep.subr.bf16.mxu0 %v5363_v40  ;;  %v4883_v40 = vpack.c.bf16 %v4229_v53, %v4228_v38  ;;  %v4230_v53 = vld [vmem:[%s6150_s11 + $0xf0] sm:$0xff] }
 0x435   :  { %4882 = vmatpush3.bf16.msra.mxu1 %v4881_v39  ;;  %v4231_v39 = vld [vmem:[%s6150_s11 + $0xf8] sm:$0xff] }
 0x436   :  { %4884 = vmatprep.subr.bf16.mxu1 %v4883_v40  ;;  %v4887_v40 = vpack.c.bf16 %v4231_v39, %v4230_v53 }
 0x437   :  { %4129 = vmatpush1.bf16.msra.mxu0 %v5361_v22  ;;  %v6086_v22 = vld [vmem:[%s6147_s8] sm:$0xf] }
 0x438   :  { %4130 = vmatprep.subr.bf16.mxu0 %v5366_v24  ;;  %v2087_v24 = vrot.slane %v6086_v22, %v5909_v43  ;;  %v2095_v12 = vrot.slane %v6086_v22, %v1712_v29  ;;  %v4213_v29 = vld [vmem:[%s6150_s11 + $0x68] sm:$0xff] }
 0x439   :  { %v4885_v38 = vpack.c.bf16 %v4213_v29, %v4212_v32 }
 0x43b   :  { %4131 = vmatpush1.bf16.msra.mxu0 %v5364_v33  ;;  %v2091_v33 = vrot.slane %v6086_v22, %v5917_v46  ;;  %4886 = vmatpush3.bf16.msra.mxu1 %v4885_v38 }
 0x43c   :  { %4132 = vmatprep.subr.bf16.mxu0 %v5369_v0  ;;  %v2099_v0 = vrot.slane %v6086_v22, %v1716_v50  ;;  %v4214_v22 = vld [vmem:[%s6150_s11 + $0x70] sm:$0xff]  ;;  %4888 = vmatprep.subr.bf16.mxu1 %v4887_v40 }
 0x43f   :  { %4133 = vmatpush1.bf16.msra.mxu0 %v5367_v45 }
 0x440   :  { %4134 = vmatprep.subr.bf16.mxu0 %v5372_v48 }
 0x443   :  { %4135 = vmatpush1.bf16.msra.mxu0 %v5370_v49 }
 0x444   :  { %4136 = vmatprep.subr.bf16.mxu0 %v5375_v51 }
 0x447   :  { %4137 = vmatpush1.bf16.msra.mxu0 %v5373_v52 }
 0x448   :  { %4138 = vmatprep.subr.bf16.mxu0 %v5378_v55 }
 0x44b   :  { %4139 = vmatpush1.bf16.msra.mxu0 %v5376_v56 }
 0x44c   :  { %4140 = vmatprep.subr.bf16.mxu0 %v5381_v57 }
 0x44f   :  { %4141 = vmatpush1.bf16.msra.mxu0 %v5379_v17 }
 0x450   :  { %4142 = vmatprep.subr.bf16.mxu0 %v5384_v18 }
 0x453   :  { %4143 = vmatpush1.bf16.msra.mxu0 %v5382_v1 }
 0x454   :  { %4144 = vmatprep.subr.bf16.mxu0 %v5387_v59 }
 0x457   :  { %4145 = vmatpush1.bf16.msra.mxu0 %v5385_v61 }
 0x458   :  { %4146 = vmatprep.subr.bf16.mxu0 %v5390_v62 }
 0x45b   :  { %4147 = vmatpush1.bf16.msra.mxu0 %v5388_v4 }
 0x45c   :  { %4157 = vmatprep.subr.bf16.mxu0 %v5393_v5  ;;  %v5391_v5 = vld [vmem:[#allocation8 + $0x100] ss:$8 sps:$4 sm:$0xff]  }
 0x4f1   :  { %v3541_v45 = vpop.f32.mrb[60].mxu0 }
 0x4f2   :  { %v4907_v48 = vadd.f32 %v3541_v45, %v2087_v24  ;;  %v6095_v49 = vpop.f32.mrb[96].mxu1  ;;  %v3543_v51 = vpop.f32.mrb[61].mxu0  ;;  %v4215_v24 = vld [vmem:[%s6150_s11 + $0x78] sm:$0xff] }
 0x4f3   :  { %v4908_v52 = vadd.f32 %v3543_v51, %v2091_v33  ;;  %v3707_v55 = vpop.f32.mrb[97].mxu1  ;;  %v3545_v56 = vpop.f32.mrb[62].mxu0  ;;  %v4909_v34 = vadd.f32 %v6095_v49, %v2095_v12  ;;  %v4889_v33 = vpack.c.bf16 %v4215_v24, %v4214_v22 }
 0x4f4   :  { %v3712_v57 = vmax.f32 %v4907_v48, 0.0  ;;  %v4910_v17 = vadd.f32 %v3707_v55, %v2099_v0  ;;  %v3709_v18 = vpop.f32.mrb[98].mxu1  ;;  %v3546_v1 = vpop.f32.mrb[63].mxu0  ;;  %v3784_v0 = vld [vmem:[%s6149_s10] sm:$0x3]  ;;  %s5546_s10 = smov [#allocation9]  }
 0x4f5   :  { %v3713_v59 = vmax.f32 %v4908_v52, 0.0  ;;  %v3710_v61 = vpop.f32.mrb[99].mxu1  ;;  %v3714_v37 = vmax.f32 %v4909_v34, 0.0  ;;  %4890 = vmatpush3.bf16.msra.mxu1 %v4889_v33  ;;  %v3789_v45 = vrot.slane %v3784_v0, %v5909_v43  ;;  %v3793_v48 = vrot.slane %v3784_v0, %v5917_v46  ;;  %s4317_s25 = sshll.u32 %s5546_s10, 4  ;;  %s4318_s25 = int_to_ptr.vmem [resolvable:$true] %s4317_s25 }
 0x4f6   :  { %v3715_v62 = vmax.f32 %v4910_v17, 0.0  ;;  %v3716_v6 = vpack.c.bf16 %v3712_v57, %v3712_v57  ;;  %s5505_s27 = scalar_lea.vmem %s4318_s25, 32  ;;  %p5510_p11 = scmp.lt.s32.totalorder %s4318_s25, %s4318_s25 }
 0x4f7   :  { %v3717_v4 = vpack.c.bf16 %v3713_v59, %v3713_v59  ;;  %v3718_v47 = vpack.c.bf16 %v3714_v37, %v3714_v37  ;;  %v4738_v59 = vld [vmem:[%s6151_s12] ss:$0 sm:$0xff]  ;;  %p5506_p10 = scmp.ne.s32.totalorder %s4318_s25, %s5505_s27  ;;  %p5511_p12 = scmp.lt.s32.totalorder %s5505_s27, %s5505_s27 }
 0x4f8   :  { %v3719_v50 = vpack.c.bf16 %v3715_v62, %v3715_v62 }
 0x4f9   :  { %4148 = vmatprep.mubr.bf16.mxu0 %v3717_v4  ;;  %p5512_p13 = por %p5511_p12, %p5510_p11 }
 0x4fa   :  { %4149 = vmatmul.mubr.bf16.vlgmr.msra.gmra.mrb[64].mxu0 %v3716_v6 }
 0x4fb   :  { %4158 = vmatpush1.bf16.msra.mxu0 %v5391_v5  ;;  %4189 = vmatprep.mubr.bf16.mxu0 %v3719_v50  ;;  %p5513_p0 = pnand %p5512_p13, %p5506_p10 }
 0x4fc   :  { %4159 = vmatprep.subr.bf16.mxu0 %v5396_v7 }
 0x4ff   :  { %4160 = vmatpush1.bf16.msra.mxu0 %v5394_v63 }
 0x500   :  { %4161 = vmatprep.subr.bf16.mxu0 %v5399_v3 }
 0x503   :  { %4162 = vmatpush1.bf16.msra.mxu0 %v5397_v15 }
 0x504   :  { %4163 = vmatprep.subr.bf16.mxu0 %v5402_v11 }
 0x507   :  { %4164 = vmatpush1.bf16.msra.mxu0 %v5400_v13 }
 0x508   :  { %4165 = vmatprep.subr.bf16.mxu0 %v5405_v8 }
 0x50b   :  { %4166 = vmatpush1.bf16.msra.mxu0 %v5403_v9 }
 0x50c   :  { %4167 = vmatprep.subr.bf16.mxu0 %v5408_v14 }
 0x50f   :  { %4168 = vmatpush1.bf16.msra.mxu0 %v5406_v16 }
 0x510   :  { %4169 = vmatprep.subr.bf16.mxu0 %v5411_v44 }
 0x513   :  { %4170 = vmatpush1.bf16.msra.mxu0 %v5409_v58 }
 0x514   :  { %4171 = vmatprep.subr.bf16.mxu0 %v5414_v20 }
 0x517   :  { %4172 = vmatpush1.bf16.msra.mxu0 %v5412_v54 }
 0x518   :  { %4173 = vmatprep.subr.bf16.mxu0 %v5417_v60 }
 0x51b   :  { %4174 = vmatpush1.bf16.msra.mxu0 %v5415_v27 }
 0x51c   :  { %4175 = vmatprep.subr.bf16.mxu0 %v5420_v21 }
 0x51f   :  { %4176 = vmatpush1.bf16.msra.mxu0 %v5418_v2 }
 0x520   :  { %4177 = vmatprep.subr.bf16.mxu0 %v5423_v23 }
 0x523   :  { %4178 = vmatpush1.bf16.msra.mxu0 %v5421_v19 }
 0x524   :  { %4179 = vmatprep.subr.bf16.mxu0 %v5426_v42 }
 0x527   :  { %4180 = vmatpush1.bf16.msra.mxu0 %v5424_v41 }
 0x528   :  { %4181 = vmatprep.subr.bf16.mxu0 %v5429_v25 }
 0x52b   :  { %4182 = vmatpush1.bf16.msra.mxu0 %v5427_v26 }
 0x52c   :  { %4183 = vmatprep.subr.bf16.mxu0 %v5432_v28 }
 0x52f   :  { %4184 = vmatpush1.bf16.msra.mxu0 %v5430_v30 }
 0x530   :  { %4185 = vmatprep.subr.bf16.mxu0 %v5435_v31 }
 0x533   :  { %4186 = vmatpush1.bf16.msra.mxu0 %v5433_v10 }
 0x534   :  { %4187 = vmatprep.subr.bf16.mxu0 %v5438_v35 }
 0x537   :  { %4188 = vmatpush1.bf16.msra.mxu0 %v5436_v36 }
 0x53a   :  { %4190 = vmatmul.mubr.bf16.vlgmr.msra.gmra.mrb[64].mxu0 %v3718_v47 }
 0x60d   :  { %v4191_v49 = vpop.f32.mrb[64].mxu0 }
 0x60e   :  { %v4911_v51 = vadd.f32 %v4191_v49, %v3789_v45  ;;  %v4193_v52 = vpop.f32.mrb[65].mxu0 }
 0x60f   :  { %v4912_v55 = vadd.f32 %v4193_v52, %v3793_v48  ;;  %v4195_v56 = vpop.f32.mrb[66].mxu0 }
 0x610   :  { %v4196_v57 = vpop.f32.mrb[67].mxu0  ;;  %v4198_v18 = vmax.f32 %v4911_v51, 0.0 }
 0x611   :  { %v4199_v17 = vmax.f32 %v4912_v55, 0.0 }
 0x613   :  { %4303 = vmatprep.mubr.f32.mxu1 %v4199_v17 }
 0x614   :  { %4304 = vmatmul.mubr.f32.vlgmr.msra.gmra.mrb[100].mxu1 %v4198_v18 }
 0x6e7   :  { %v4797_v1 = vpop.f32.mrb[100].mxu1 }
 0x6e8   :  { %v4798_v61 = vpop.f32.mrb[101].mxu1 }
 0x6e9   :  { %v4799_v43 = vadd.f32 %v4798_v61, %v4797_v1 }
 0x6eb   :  { %v4306_v46 = vadd.f32 %v4799_v43, %v4738_v59 }
 0x6ed   :  { %4310 = vst.msk [vmem:[#allocation9] sm:$0x3] %vm4309_vm7, %v4306_v46 }
 0x6ee   :  { %5516 = shalt.err (!%p5513_p0)
}
 0x6ef   :  { %s5517_s0 = scalar_lea.hbm %s6152_s13, 32 }
 0x6f0   :  { %p5518_p1 = scmp.ne.s32.totalorder %s6152_s13, %s5517_s0  ;;  %p5521_p2 = scmp.lt.u32.totalorder %s5517_s0, %s6152_s13 }
 0x6f2   :  { %p5523_p3 = pnand %p5521_p2, %p5518_p1 }
 0x6f4   :  { %5526 = shalt.err (!%p5523_p3)
}
 0x6f5   :  { %4320 = dma.vmem_to_hbm [thread:$0]  %s4318_s25, 32, %s6152_s13, [#allocation5]  }
 0x6f6   :  { %5531 = dma.done.wait [#allocation5], 32  }
 0x6f7   :  { %5532 = vsyncadd [#allocation5], 4294967264 }
 0x6f8   :  { %4324 = vsyncpa [#allocation4], 1 }
 0x6f9   :  { %4325 = vsyncpa [#allocation7], 1 }
 0x6fa   :  { %4326 = vsyncpa [#allocation5], 1 }

</bundles_post_ra>
